<compile_context>
chip_gen: v7x
topology: tpu7x:2x2x1
jax: 0.10.0
libtpu: 0.0.40
codegen_flags: <defaults>
</compile_context>

<pallas_src>
import functools

import jax
import jax.numpy as jnp
from jax.experimental import pallas as pl
from jax.experimental.pallas import tpu as pltpu


# --------------------------------------------------------------------------
# helpers
# --------------------------------------------------------------------------
def _round_up(v, m):
    return ((v + m - 1) // m) * m


def _pick_tile(n, pref, quantum=128):
    """Largest multiple of `quantum` that divides n and is <= min(pref, n).

    Callers guarantee n % quantum == 0 (N is padded to a multiple of 256).
    """
    t = min(pref, n)
    t = max(quantum, t - t % quantum)
    while n % t != 0:
        t -= quantum
    return t


def _pad2(a, rows, cols):
    return jnp.pad(a, ((0, rows - a.shape[0]), (0, cols - a.shape[1])))


# --------------------------------------------------------------------------
# Fused adj-matmul kernel:  out_j = [mask_j *] relu?(adj @ xw)
#   grid = (N/tm, N/tk); axis 1 (k) is the adj contraction axis.
#   refs: adj (tm,tk) bf16 | xw (tk,C) bf16 | masks[(tm,C) bf16]*n_masks |
#         outs[(tm,C)]*max(1,n_masks) | acc (tm,C) f32 scratch
#   Masks already carry the 1/keep_prob scale ({0, 2.0}).
# --------------------------------------------------------------------------
def _adj_gcn_kernel(adj_ref, xw_ref, *rest, n_masks, apply_relu):
    n_outs = max(1, n_masks)
    mask_refs = rest[:n_masks]
    out_refs = rest[n_masks:n_masks + n_outs]
    acc_ref = rest[n_masks + n_outs]

    k = pl.program_id(1)

    @pl.when(k == 0)
    def _():
        acc_ref[...] = jnp.zeros_like(acc_ref)

    # bf16 x bf16 on the MXU, f32 accumulation in VMEM scratch.
    acc_ref[...] += jnp.dot(adj_ref[...], xw_ref[...],
                            preferred_element_type=jnp.float32)

    @pl.when(k == pl.num_programs(1) - 1)
    def _():
        out = acc_ref[...]
        if apply_relu:
            out = jnp.maximum(out, 0.0)
        if n_masks == 0:
            out_refs[0][...] = out.astype(out_refs[0].dtype)
        else:
            # One independent dropout mask per output (dedups the shared
            # first layer across the main / self-supervised branches).
            for m_ref, o_ref in zip(mask_refs, out_refs):
                o_ref[...] = (out * m_ref[...].astype(jnp.float32)
                              ).astype(o_ref.dtype)


def adj_gcn_layer(adj, xw, masks=(), *, apply_relu, out_dtype=jnp.bfloat16,
                  tm=None, tk=None):
    """Tiled  outs = [mask *] relu?(adj @ xw), one streamed adj pass.

    adj   : (N, N) bf16, N a multiple of 256.
    xw    : (N, C) bf16, C a multiple of 128 (x @ W^T already hoisted).
    masks : tuple of (N, C) bf16 keep-masks in {0, 2.0}; one output per mask
            (empty tuple -> single unmasked output).
    """
    n = adj.shape[0]
    c = xw.shape[1]
    assert adj.shape == (n, n) and xw.shape[0] == n
    assert n % 256 == 0 and c % 128 == 0

    masks = tuple(masks)
    n_masks = len(masks)
    n_outs = max(1, n_masks)
    out_isz = 4 if out_dtype == jnp.float32 else 2

    # Tiles: multiples of 128; tm capped at N/2 so grid[0] >= 2 (v7x megacore).
    tm = _pick_tile(n, min(1024 if tm is None else tm, max(128, n // 2)))
    tk = _pick_tile(n, 2048 if tk is None else tk)

    def vmem_bytes(tm_, tk_):
        return (2 * tm_ * tk_ * 2              # adj tiles (double-buffered, bf16)
                + 2 * tk_ * c * 2              # xw tiles
                + 2 * n_masks * tm_ * c * 2    # mask tiles
                + 2 * n_outs * tm_ * c * out_isz
                + tm_ * c * 4)                 # f32 accumulator scratch

    budget = 40 * 1024 * 1024                  # safe for v7x's 64 MiB VMEM
    while vmem_bytes(tm, tk) > budget and tk > 128:
        tk = _pick_tile(n, tk // 2)
    while vmem_bytes(tm, tk) > budget and tm > 128:
        tm = _pick_tile(n, tm // 2)

    grid = (n // tm, n // tk)

    in_specs = [
        pl.BlockSpec((tm, tk), lambda i, k: (i, k)),   # adj tile
        pl.BlockSpec((tk, c), lambda i, k: (k, 0)),    # xw rows for this k
    ] + [pl.BlockSpec((tm, c), lambda i, k: (i, 0)) for _ in range(n_masks)]

    out_specs = tuple(pl.BlockSpec((tm, c), lambda i, k: (i, 0))
                      for _ in range(n_outs))
    out_shape = tuple(jax.ShapeDtypeStruct((n, c), out_dtype)
                      for _ in range(n_outs))

    kernel = functools.partial(_adj_gcn_kernel, n_masks=n_masks,
                               apply_relu=apply_relu)

    flops = 2 * n * n * c
    bytes_accessed = (n * n * 2                       # adj streamed once
                      + grid[0] * n * c * 2           # xw re-fetched per row tile
                      + n_masks * n * c * 2
                      + n_outs * n * c * out_isz)

    outs = pl.pallas_call(
        kernel,
        grid=grid,
        in_specs=in_specs,
        out_specs=out_specs,
        out_shape=out_shape,
        scratch_shapes=[pltpu.VMEM((tm, c), jnp.float32)],
        compiler_params=pltpu.CompilerParams(
            dimension_semantics=("parallel", "arbitrary"),
            vmem_limit_bytes=int(min(max(2 * vmem_bytes(tm, tk),
                                         32 * 1024 * 1024),
                                     48 * 1024 * 1024))),
        cost_estimate=pl.CostEstimate(flops=int(flops), transcendentals=0,
                                      bytes_accessed=int(bytes_accessed)),
    )(adj, xw, *masks)

    if not isinstance(outs, (list, tuple)):
        outs = (outs,)
    return tuple(outs)


# --------------------------------------------------------------------------
# Parameter construction (mirrors net_gcn_multitask.__init__, bias=False)
# --------------------------------------------------------------------------
def init_params(key, embedding_dim, ss_dim):
    layer_num = len(embedding_dim) - 1
    keys = jax.random.split(key, layer_num + 1)
    weights = []
    for ln in range(layer_num):
        bound = 1.0 / float(embedding_dim[ln]) ** 0.5
        weights.append(jax.random.uniform(
            keys[ln], (embedding_dim[ln + 1], embedding_dim[ln]),
            minval=-bound, maxval=bound, dtype=jnp.float32))
    bound = 1.0 / float(embedding_dim[-2]) ** 0.5
    w_ss = jax.random.uniform(keys[-1], (ss_dim, embedding_dim[-2]),
                              minval=-bound, maxval=bound, dtype=jnp.float32)
    return weights, w_ss


def prepare_params(weights, w_ss):
    """One-time: transpose (out,in)->(in,out), zero-pad both dims to multiples
    of 128 (lane-dense activations), cast to bf16 (MXU-native)."""
    def prep(w):
        wt = w.T
        wt = _pad2(wt, _round_up(wt.shape[0], 128), _round_up(wt.shape[1], 128))
        return wt.astype(jnp.bfloat16)
    return [prep(w) for w in weights], prep(w_ss)


# --------------------------------------------------------------------------
# Forward pass (mirrors net_gcn_multitask.forward)
# --------------------------------------------------------------------------
def net_gcn_multitask_forward(x, adj, weights_t, w_ss_t, embedding_dim, ss_dim,
                              *, val_test=False, rng_key=None, tm=None, tk=None):
    n = adj.shape[0]
    layer_num = len(weights_t)
    n_p = max(256, _round_up(n, 256))

    # Pad N once (tiles stay multiples of 128 and grid[0] >= 2 for awkward N)
    # and cast the dominant N^2 stream + features to bf16.
    adj_bf = _pad2(adj.astype(jnp.bfloat16), n_p, n_p)
    x_p = _pad2(x.astype(jnp.bfloat16), n_p, weights_t[0].shape[0])

    def hoist(h, w_t):
        # x @ W^T only depends on the contraction index -> compute it once per
        # layer outside the kernel's k-loop (small (N,Fin)x(Fin,Fout) XLA dot).
        return jnp.dot(h, w_t, preferred_element_type=jnp.float32
                       ).astype(jnp.bfloat16)

    if val_test:
        h = x_p
        for ln in range(layer_num - 1):
            (h,) = adj_gcn_layer(adj_bf, hoist(h, weights_t[ln]),
                                 apply_relu=True, out_dtype=jnp.bfloat16,
                                 tm=tm, tk=tk)
        (out,) = adj_gcn_layer(adj_bf, hoist(h, weights_t[-1]),
                               apply_relu=False, out_dtype=jnp.float32,
                               tm=tm, tk=tk)
        return out[:n, :embedding_dim[-1]], x   # torch returns the input as x_ss

    if rng_key is None:
        rng_key = jax.random.PRNGKey(0)

    def keep_mask(branch, ln, cols):
        k = jax.random.fold_in(jax.random.fold_in(rng_key, branch), ln)
        # p=0.5 inverted dropout; the 1/keep_prob scale is folded into the mask.
        return (jax.random.bernoulli(k, 0.5, (n_p, cols))
                .astype(jnp.bfloat16) * 2.0).astype(jnp.bfloat16)

    if layer_num >= 2:
        # Layer 0 is identical for both branches up to the dropout draw:
        # one adj pass, two masks, two outputs.
        c0 = weights_t[0].shape[1]
        h, hs = adj_gcn_layer(adj_bf, hoist(x_p, weights_t[0]),
                              (keep_mask(0, 0, c0), keep_mask(1, 0, c0)),
                              apply_relu=True, out_dtype=jnp.bfloat16,
                              tm=tm, tk=tk)
        start = 1
    else:
        h, hs = x_p, x_p
        start = 0

    # Hidden layers: fuse the main / ss branches into one adj pass by
    # concatenating their hoisted xw slabs (and masks) along the lane axis.
    for ln in range(start, layer_num - 1):
        w_t = weights_t[ln]
        c = w_t.shape[1]
        xw_cat = jnp.concatenate([hoist(h, w_t), hoist(hs, w_t)], axis=1)
        m_cat = jnp.concatenate([keep_mask(0, ln, c), keep_mask(1, ln, c)],
                                axis=1)
        (out,) = adj_gcn_layer(adj_bf, xw_cat, (m_cat,), apply_relu=True,
                               out_dtype=jnp.bfloat16, tm=tm, tk=tk)
        h, hs = out[:, :c], out[:, c:]

    # Final step: the two heads (h @ W_last, hs @ W_ss) share one adj pass.
    c_last = weights_t[-1].shape[1]
    xw_cat = jnp.concatenate([hoist(h, weights_t[-1]), hoist(hs, w_ss_t)],
                             axis=1)
    (out,) = adj_gcn_layer(adj_bf, xw_cat, apply_relu=False,
                           out_dtype=jnp.float32, tm=tm, tk=tk)
    x_out = out[:n, :embedding_dim[-1]]
    x_ss = out[:n, c_last:c_last + ss_dim]
    return x_out, x_ss


if __name__ == "__main__":
    key = jax.random.PRNGKey(0)
    k_x, k_adj, k_par, k_drop = jax.random.split(key, 4)

    # Small shapes consistent with the module: N nodes, embedding_dim=[16,32,8]
    embedding_dim = (16, 32, 8)
    ss_dim = 6
    n_nodes = 512

    x = jax.random.normal(k_x, (n_nodes, embedding_dim[0]), dtype=jnp.float32)

    # Symmetric, row-normalized dense adjacency (dense stand-in for torch.spmm)
    a = jax.random.uniform(k_adj, (n_nodes, n_nodes), dtype=jnp.float32)
    a = (a + a.T) * 0.5 + jnp.eye(n_nodes, dtype=jnp.float32)
    adj = a / jnp.sum(a, axis=1, keepdims=True)

    weights, w_ss = init_params(k_par, embedding_dim, ss_dim)
    weights_t, w_ss_t = prepare_params(weights, w_ss)

    fwd_train = jax.jit(lambda xx, aa, wts, wss, kk: net_gcn_multitask_forward(
        xx, aa, wts, wss, embedding_dim, ss_dim, val_test=False, rng_key=kk))
    fwd_eval = jax.jit(lambda xx, aa, wts, wss: net_gcn_multitask_forward(
        xx, aa, wts, wss, embedding_dim, ss_dim, val_test=True))

    x_out, x_ss = fwd_train(x, adj, weights_t, w_ss_t, k_drop)
    jax.block_until_ready((x_out, x_ss))
    assert x_out.shape == (n_nodes, embedding_dim[-1])
    assert x_ss.shape == (n_nodes, ss_dim)

    x_out_eval, x_ss_eval = fwd_eval(x, adj, weights_t, w_ss_t)
    jax.block_until_ready((x_out_eval, x_ss_eval))
    assert x_out_eval.shape == (n_nodes, embedding_dim[-1])
    assert x_ss_eval.shape == x.shape

    # Sanity-check the deterministic (no-dropout) path against a pure-JAX f32
    # reference; loose tolerance for the bf16 adj / activation pipeline.
    def ref_eval(xx, aa, ws):
        h = xx
        for i, w in enumerate(ws):
            h = aa @ h
            h = h @ w.T
            if i < len(ws) - 1:
                h = jnp.maximum(h, 0.0)
        return h

    ref = ref_eval(x, adj, weights)
    rel = float(jnp.max(jnp.abs(x_out_eval - ref))
                / (jnp.max(jnp.abs(ref)) + 1e-9))
    assert rel < 0.08, f"eval output mismatch vs reference: {rel}"

    # Awkward (non multiple-of-256) node count exercises the padding path.
    n2 = 200
    x2 = jax.random.normal(jax.random.fold_in(k_x, 1), (n2, embedding_dim[0]),
                           dtype=jnp.float32)
    a2 = jax.random.uniform(jax.random.fold_in(k_adj, 1), (n2, n2),
                            dtype=jnp.float32)
    a2 = (a2 + a2.T) * 0.5 + jnp.eye(n2, dtype=jnp.float32)
    adj2 = a2 / jnp.sum(a2, axis=1, keepdims=True)
    x_out2, x_ss2 = jax.jit(lambda xx, aa, wts, wss: net_gcn_multitask_forward(
        xx, aa, wts, wss, embedding_dim, ss_dim, val_test=True))(
            x2, adj2, weights_t, w_ss_t)
    jax.block_until_ready((x_out2, x_ss2))
    assert x_out2.shape == (n2, embedding_dim[-1])
    assert x_ss2.shape == x2.shape

    print("KERNEL_OK")
</pallas_src>

<mosaic_0001>
module attributes {stable_mosaic.version = 11 : i64} {
  func.func @_adj_gcn_kernel(%arg0: i32, %arg1: i32, %arg2: memref<256x512xbf16, #tpu.memory_space<vmem>>, %arg3: memref<512x128xbf16, #tpu.memory_space<vmem>>, %arg4: memref<256x128xbf16, #tpu.memory_space<vmem>>, %arg5: memref<256x128xbf16, #tpu.memory_space<vmem>>, %arg6: memref<256x128xbf16, #tpu.memory_space<vmem>>, %arg7: memref<256x128xbf16, #tpu.memory_space<vmem>>, %arg8: memref<256x128xf32, #tpu.memory_space<vmem>>) attributes {dimension_semantics = [#tpu.dimension_semantics<parallel>, #tpu.dimension_semantics<arbitrary>], iteration_bounds = array<i64: 2, 1>, scalar_prefetch = 0 : i64, scratch_operands = 1 : i64, tpu.core_type = #tpu.core_type<tc>, window_params = [{transform_indices = @transform_0, window_bounds = array<i64: 256, 512>}, {transform_indices = @transform_1, window_bounds = array<i64: 512, 128>}, {transform_indices = @transform_2, window_bounds = array<i64: 256, 128>}, {transform_indices = @transform_3, window_bounds = array<i64: 256, 128>}, {transform_indices = @transform_4, window_bounds = array<i64: 256, 128>}, {transform_indices = @transform_5, window_bounds = array<i64: 256, 128>}]} {
    %c0_i32 = arith.constant 0 : i32
    %0 = arith.cmpi eq, %arg1, %c0_i32 : i32
    %1 = arith.extui %0 : i1 to i32
    %c0_i32_0 = arith.constant 0 : i32
    %2 = arith.cmpi ne, %1, %c0_i32_0 : i32
    scf.if %2 {
      %cst_10 = arith.constant 0.000000e+00 : f32
      %12 = vector.broadcast %cst_10 : f32 to vector<256x128xf32>
      %c0_11 = arith.constant 0 : index
      %c0_12 = arith.constant 0 : index
      %13 = vector.load %arg8[%c0_11, %c0_12] : memref<256x128xf32, #tpu.memory_space<vmem>>, vector<256x128xf32>
      tpu.vector_store %arg8[%c0_11, %c0_12], %12 {strides = array<i32>} : memref<256x128xf32, #tpu.memory_space<vmem>>, vector<256x128xf32>,
    } else {
    }
    %c0 = arith.constant 0 : index
    %c0_1 = arith.constant 0 : index
    %3 = vector.load %arg8[%c0, %c0_1] : memref<256x128xf32, #tpu.memory_space<vmem>>, vector<256x128xf32>
    %c0_2 = arith.constant 0 : index
    %c0_3 = arith.constant 0 : index
    %4 = vector.load %arg2[%c0_2, %c0_3] : memref<256x512xbf16, #tpu.memory_space<vmem>>, vector<256x512xbf16>
    %c0_4 = arith.constant 0 : index
    %c0_5 = arith.constant 0 : index
    %5 = vector.load %arg3[%c0_4, %c0_5] : memref<512x128xbf16, #tpu.memory_space<vmem>>, vector<512x128xbf16>
    %cst = arith.constant dense<0.000000e+00> : vector<256x128xf32>
    %6 = tpu.matmul %4, %5, %cst {dimension_numbers = #tpu.dot_dimension_numbers<[1], [0], [0], [1], [0, 0, 1, 1], [], []>} : vector<256x512xbf16>, vector<512x128xbf16>, vector<256x128xf32> -> vector<256x128xf32>
    %7 = arith.addf %3, %6 : vector<256x128xf32>
    %c0_6 = arith.constant 0 : index
    %c0_7 = arith.constant 0 : index
    %8 = vector.load %arg8[%c0_6, %c0_7] : memref<256x128xf32, #tpu.memory_space<vmem>>, vector<256x128xf32>
    tpu.vector_store %arg8[%c0_6, %c0_7], %7 {strides = array<i32>} : memref<256x128xf32, #tpu.memory_space<vmem>>, vector<256x128xf32>,
    %c0_i32_8 = arith.constant 0 : i32
    %9 = arith.cmpi eq, %arg1, %c0_i32_8 : i32
    %10 = arith.extui %9 : i1 to i32
    %c0_i32_9 = arith.constant 0 : i32
    %11 = arith.cmpi ne, %10, %c0_i32_9 : i32
    scf.if %11 {
      %c0_10 = arith.constant 0 : index
      %c0_11 = arith.constant 0 : index
      %12 = vector.load %arg8[%c0_10, %c0_11] : memref<256x128xf32, #tpu.memory_space<vmem>>, vector<256x128xf32>
      %cst_12 = arith.constant 0.000000e+00 : f32
      %13 = vector.broadcast %cst_12 : f32 to vector<256x128xf32>
      %14 = arith.maximumf %12, %13 : vector<256x128xf32>
      %c0_13 = arith.constant 0 : index
      %c0_14 = arith.constant 0 : index
      %15 = vector.load %arg4[%c0_13, %c0_14] : memref<256x128xbf16, #tpu.memory_space<vmem>>, vector<256x128xbf16>
      %16 = arith.extf %15 : vector<256x128xbf16> to vector<256x128xf32>
      %17 = arith.mulf %14, %16 : vector<256x128xf32>
      %18 = arith.truncf %17 : vector<256x128xf32> to vector<256x128xbf16>
      %c0_15 = arith.constant 0 : index
      %c0_16 = arith.constant 0 : index
      %19 = vector.load %arg6[%c0_15, %c0_16] : memref<256x128xbf16, #tpu.memory_space<vmem>>, vector<256x128xbf16>
      tpu.vector_store %arg6[%c0_15, %c0_16], %18 {strides = array<i32>} : memref<256x128xbf16, #tpu.memory_space<vmem>>, vector<256x128xbf16>,
      %c0_17 = arith.constant 0 : index
      %c0_18 = arith.constant 0 : index
      %20 = vector.load %arg5[%c0_17, %c0_18] : memref<256x128xbf16, #tpu.memory_space<vmem>>, vector<256x128xbf16>
      %21 = arith.extf %20 : vector<256x128xbf16> to vector<256x128xf32>
      %22 = arith.mulf %14, %21 : vector<256x128xf32>
      %23 = arith.truncf %22 : vector<256x128xf32> to vector<256x128xbf16>
      %c0_19 = arith.constant 0 : index
      %c0_20 = arith.constant 0 : index
      %24 = vector.load %arg7[%c0_19, %c0_20] : memref<256x128xbf16, #tpu.memory_space<vmem>>, vector<256x128xbf16>
      tpu.vector_store %arg7[%c0_19, %c0_20], %23 {strides = array<i32>} : memref<256x128xbf16, #tpu.memory_space<vmem>>, vector<256x128xbf16>,
    } else {
    }
    return
  }
  func.func @transform_0(%arg0: i32, %arg1: i32) -> (i32, i32) {
    %c0_i32 = arith.constant 0 : i32
    return %arg0, %arg1 : i32, i32
  }
  func.func @transform_1(%arg0: i32, %arg1: i32) -> (i32, i32) {
    %c0_i32 = arith.constant 0 : i32
    %c0_i32_0 = arith.constant 0 : i32
    return %arg1, %c0_i32 : i32, i32
  }
  func.func @transform_2(%arg0: i32, %arg1: i32) -> (i32, i32) {
    %c0_i32 = arith.constant 0 : i32
    %c0_i32_0 = arith.constant 0 : i32
    return %arg0, %c0_i32 : i32, i32
  }
  func.func @transform_3(%arg0: i32, %arg1: i32) -> (i32, i32) {
    %c0_i32 = arith.constant 0 : i32
    %c0_i32_0 = arith.constant 0 : i32
    return %arg0, %c0_i32 : i32, i32
  }
  func.func @transform_4(%arg0: i32, %arg1: i32) -> (i32, i32) {
    %c0_i32 = arith.constant 0 : i32
    %c0_i32_0 = arith.constant 0 : i32
    return %arg0, %c0_i32 : i32, i32
  }
  func.func @transform_5(%arg0: i32, %arg1: i32) -> (i32, i32) {
    %c0_i32 = arith.constant 0 : i32
    %c0_i32_0 = arith.constant 0 : i32
    return %arg0, %c0_i32 : i32, i32
  }
}

module attributes {stable_mosaic.version = 11 : i64} {
  func.func @_adj_gcn_kernel(%arg0: i32, %arg1: i32, %arg2: memref<256x512xbf16, #tpu.memory_space<vmem>>, %arg3: memref<512x256xbf16, #tpu.memory_space<vmem>>, %arg4: memref<256x256xf32, #tpu.memory_space<vmem>>, %arg5: memref<256x256xf32, #tpu.memory_space<vmem>>) attributes {dimension_semantics = [#tpu.dimension_semantics<parallel>, #tpu.dimension_semantics<arbitrary>], iteration_bounds = array<i64: 2, 1>, scalar_prefetch = 0 : i64, scratch_operands = 1 : i64, tpu.core_type = #tpu.core_type<tc>, window_params = [{transform_indices = @transform_0, window_bounds = array<i64: 256, 512>}, {transform_indices = @transform_1, window_bounds = array<i64: 512, 256>}, {transform_indices = @transform_2, window_bounds = array<i64: 256, 256>}]} {
    %c0_i32 = arith.constant 0 : i32
    %0 = arith.cmpi eq, %arg1, %c0_i32 : i32
    %1 = arith.extui %0 : i1 to i32
    %c0_i32_0 = arith.constant 0 : i32
    %2 = arith.cmpi ne, %1, %c0_i32_0 : i32
    scf.if %2 {
      %cst_10 = arith.constant 0.000000e+00 : f32
      %12 = vector.broadcast %cst_10 : f32 to vector<256x256xf32>
      %c0_11 = arith.constant 0 : index
      %c0_12 = arith.constant 0 : index
      %13 = vector.load %arg5[%c0_11, %c0_12] : memref<256x256xf32, #tpu.memory_space<vmem>>, vector<256x256xf32>
      tpu.vector_store %arg5[%c0_11, %c0_12], %12 {strides = array<i32>} : memref<256x256xf32, #tpu.memory_space<vmem>>, vector<256x256xf32>,
    } else {
    }
    %c0 = arith.constant 0 : index
    %c0_1 = arith.constant 0 : index
    %3 = vector.load %arg5[%c0, %c0_1] : memref<256x256xf32, #tpu.memory_space<vmem>>, vector<256x256xf32>
    %c0_2 = arith.constant 0 : index
    %c0_3 = arith.constant 0 : index
    %4 = vector.load %arg2[%c0_2, %c0_3] : memref<256x512xbf16, #tpu.memory_space<vmem>>, vector<256x512xbf16>
    %c0_4 = arith.constant 0 : index
    %c0_5 = arith.constant 0 : index
    %5 = vector.load %arg3[%c0_4, %c0_5] : memref<512x256xbf16, #tpu.memory_space<vmem>>, vector<512x256xbf16>
    %cst = arith.constant dense<0.000000e+00> : vector<256x256xf32>
    %6 = tpu.matmul %4, %5, %cst {dimension_numbers = #tpu.dot_dimension_numbers<[1], [0], [0], [1], [0, 0, 1, 1], [], []>} : vector<256x512xbf16>, vector<512x256xbf16>, vector<256x256xf32> -> vector<256x256xf32>
    %7 = arith.addf %3, %6 : vector<256x256xf32>
    %c0_6 = arith.constant 0 : index
    %c0_7 = arith.constant 0 : index
    %8 = vector.load %arg5[%c0_6, %c0_7] : memref<256x256xf32, #tpu.memory_space<vmem>>, vector<256x256xf32>
    tpu.vector_store %arg5[%c0_6, %c0_7], %7 {strides = array<i32>} : memref<256x256xf32, #tpu.memory_space<vmem>>, vector<256x256xf32>,
    %c0_i32_8 = arith.constant 0 : i32
    %9 = arith.cmpi eq, %arg1, %c0_i32_8 : i32
    %10 = arith.extui %9 : i1 to i32
    %c0_i32_9 = arith.constant 0 : i32
    %11 = arith.cmpi ne, %10, %c0_i32_9 : i32
    scf.if %11 {
      %c0_10 = arith.constant 0 : index
      %c0_11 = arith.constant 0 : index
      %12 = vector.load %arg5[%c0_10, %c0_11] : memref<256x256xf32, #tpu.memory_space<vmem>>, vector<256x256xf32>
      %c0_12 = arith.constant 0 : index
      %c0_13 = arith.constant 0 : index
      %13 = vector.load %arg4[%c0_12, %c0_13] : memref<256x256xf32, #tpu.memory_space<vmem>>, vector<256x256xf32>
      tpu.vector_store %arg4[%c0_12, %c0_13], %12 {strides = array<i32>} : memref<256x256xf32, #tpu.memory_space<vmem>>, vector<256x256xf32>,
    } else {
    }
    return
  }
  func.func @transform_0(%arg0: i32, %arg1: i32) -> (i32, i32) {
    %c0_i32 = arith.constant 0 : i32
    return %arg0, %arg1 : i32, i32
  }
  func.func @transform_1(%arg0: i32, %arg1: i32) -> (i32, i32) {
    %c0_i32 = arith.constant 0 : i32
    %c0_i32_0 = arith.constant 0 : i32
    return %arg1, %c0_i32 : i32, i32
  }
  func.func @transform_2(%arg0: i32, %arg1: i32) -> (i32, i32) {
    %c0_i32 = arith.constant 0 : i32
    %c0_i32_0 = arith.constant 0 : i32
    return %arg0, %c0_i32 : i32, i32
  }
}

</mosaic_0001>

<bundles_post_ra>
// kernel: _lambda_.2
= control target key start
LH: loop header
LB: loop body
LE: loop exit
PB: predicated region body
PF: predicated region fallthrough
CT: control target
= control target key end

     0   :  { %s2605_s18 = smov 0   ;;  %s2607_s19 = smov 0   ;;  %s2889_s0 = inlined_call_operand.vmem [shape: bf16[512,512], index: 0, kind: input, shape index: {}]   ;;  %s2890_s1 = inlined_call_operand.vmem [shape: bf16[512,128], index: 1, kind: input, shape index: {}]   ;;  %s2891_s2 = inlined_call_operand.vmem [shape: bf16[512,128], index: 2, kind: input, shape index: {}]   ;;  %s2892_s3 = inlined_call_operand.vmem [shape: bf16[512,128], index: 3, kind: input, shape index: {}]   ;;  %s2893_s4 = inlined_call_operand.vmem [shape: bf16[512,128], index: 4, kind: output, shape index: {0}]   ;;  %s2894_s5 = inlined_call_operand.vmem [shape: bf16[512,128], index: 5, kind: output, shape index: {1}]  }
   0x1   :  { %s2609_s20 = smov 0  }
   0x2 LB: > { %s28_s21 = sadd.s32 1, %s2569_s19  ;;  %p1906_p0 = scmp.ge.s32.totalorder %s2573_s20, 1  ;;  %s2573_s20 = sphi %s2609_s20, %s16_s20   ;;  %s2569_s19 = sphi %s2607_s19, %s2896_s19   ;;  %s2565_s18 = sphi %s2605_s18, %s2895_s18  }
   0x3   : > { %p30_p1 = scmp.ge.s32.totalorder %s28_s21, 2  ;;  %p244_p2 = scmp.lt.s32.totalorder %s2573_s20, 3 }
   0x5   : > { %s2898_s21 = smov (%p30_p1, %s28_s21), 0  ;;  %p245_p3 = pnand %p1906_p0, %p244_p2 }
   0x6   : > { %v2423_v0 = vld [vmem:[%s2890_s1 + $0x40] sm:$0xff] (!%p245_p3)   ;;  %v2427_v4 = vld [vmem:[%s2890_s1 + $0x48] sm:$0xff] (!%p245_p3)   ;;  %v2431_v8 = vld [vmem:[%s2890_s1 + $0x50] sm:$0xff] (!%p245_p3)   ;;  %s1907_s8 = sshll.u32 (!%p245_p3), %s2565_s18, 5  ;;  %s1914_s30 = sshll.u32 (!%p245_p3), %s2565_s18, 4 }
   0x7   : > { %248 = sbr.rel (%p245_p3) target bundleno = 387 (0x183), region = 36  ;;  %v2424_v1 = vld [vmem:[%s2890_s1 + $0xc0] sm:$0xff] (!%p245_p3)   ;;  %2175 = vmatprep.subr.bf16.mxu0 (!%p245_p3), %v2423_v0  ;;  %v2428_v5 = vld [vmem:[%s2890_s1 + $0xc8] sm:$0xff] (!%p245_p3)   ;;  %v2432_v9 = vld [vmem:[%s2890_s1 + $0xd0] sm:$0xff] (!%p245_p3)   ;;  %p299_p4 = scmp.lt.s32.totalorder (!%p245_p3), %s1907_s8, 63 }
   0x8   : > { %v2425_v2 = vld [vmem:[%s2890_s1] sm:$0xff] (!%p245_p3)   ;;  %2287 = vmatprep.subr.bf16.mxu1 (!%p245_p3), %v2424_v1  ;;  %v2429_v6 = vld [vmem:[%s2890_s1 + $0x8] sm:$0xff] (!%p245_p3)   ;;  %v2433_v10 = vld [vmem:[%s2890_s1 + $0x10] sm:$0xff] (!%p245_p3)   ;;  %p328_p5 = scmp.lt.s32.totalorder (!%p245_p3), %s1914_s30, 31 }
   0x9   : > { %v2426_v3 = vld [vmem:[%s2890_s1 + $0x80] sm:$0xff] (!%p245_p3)   ;;  %2176 = vmatpush3.bf16.msra.mxu0 (!%p245_p3), %v2425_v2  ;;  %v2430_v7 = vld [vmem:[%s2890_s1 + $0x88] sm:$0xff] (!%p245_p3)   ;;  %v2434_v11 = vld [vmem:[%s2890_s1 + $0x90] sm:$0xff] (!%p245_p3)  }
   0xa   : > { %2288 = vmatpush3.bf16.msra.mxu1 (!%p245_p3), %v2426_v3  ;;  %2177 = vmatprep.subr.bf16.mxu0 (!%p245_p3), %v2427_v4  ;;  %v2435_v12 = vld [vmem:[%s2890_s1 + $0x58] sm:$0xff] (!%p245_p3)   ;;  %v2439_v16 = vld [vmem:[%s2890_s1 + $0x60] sm:$0xff] (!%p245_p3)   ;;  %v2443_v20 = vld [vmem:[%s2890_s1 + $0x68] sm:$0xff] (!%p245_p3)  }
   0xb   : > { %2289 = vmatprep.subr.bf16.mxu1 (!%p245_p3), %v2428_v5  ;;  %v2436_v13 = vld [vmem:[%s2890_s1 + $0xd8] sm:$0xff] (!%p245_p3)   ;;  %v2440_v17 = vld [vmem:[%s2890_s1 + $0xe0] sm:$0xff] (!%p245_p3)   ;;  %v2444_v21 = vld [vmem:[%s2890_s1 + $0xe8] sm:$0xff] (!%p245_p3)  }
   0xc   : > { %v2437_v14 = vld [vmem:[%s2890_s1 + $0x18] sm:$0xff] (!%p245_p3)   ;;  %v2441_v18 = vld [vmem:[%s2890_s1 + $0x20] sm:$0xff] (!%p245_p3)   ;;  %v2445_v22 = vld [vmem:[%s2890_s1 + $0x28] sm:$0xff] (!%p245_p3)  }
   0xd   : > { %2178 = vmatpush3.bf16.msra.mxu0 (!%p245_p3), %v2429_v6  ;;  %v2438_v15 = vld [vmem:[%s2890_s1 + $0x98] sm:$0xff] (!%p245_p3)   ;;  %v2442_v19 = vld [vmem:[%s2890_s1 + $0xa0] sm:$0xff] (!%p245_p3)   ;;  %v2446_v23 = vld [vmem:[%s2890_s1 + $0xa8] sm:$0xff] (!%p245_p3)  }
   0xe   : > { %2290 = vmatpush3.bf16.msra.mxu1 %v2430_v7  ;;  %2179 = vmatprep.subr.bf16.mxu0 %v2431_v8  ;;  %s2900_s8 = smov (!%p299_p4, %s1907_s8), 63  ;;  %v2447_v24 = vld [vmem:[%s2890_s1 + $0x70] sm:$0xff]   ;;  %v2451_v28 = vld [vmem:[%s2890_s1 + $0x78] sm:$0xff]   ;;  %s2902_s30 = smov (!%p328_p5, %s1914_s30), 31 }
   0xf   : > { %2291 = vmatprep.subr.bf16.mxu1 %v2432_v9  ;;  %v2448_v25 = vld [vmem:[%s2890_s1 + $0xf0] sm:$0xff]   ;;  %s2016_s11 = sshll.u32 %s2900_s8, 4  ;;  %v2452_v29 = vld [vmem:[%s2890_s1 + $0xf8] sm:$0xff]   ;;  %s1911_s29 = sshll.u32 %s2900_s8, 2 }
  0x10   : > { %v2449_v26 = vld [vmem:[%s2890_s1 + $0x30] sm:$0xff]   ;;  %s2722_s24 = scalar_lea.vmem %s2889_s0, %s2016_s11  ;;  %v2453_v30 = vld [vmem:[%s2890_s1 + $0x38] sm:$0xff]   ;;  %s2799_s9 = scalar_lea.vmem %s2891_s2, %s1911_s29 }
  0x11   : > { %2180 = vmatpush3.bf16.msra.mxu0 %v2433_v10  ;;  %v2450_v27 = vld [vmem:[%s2890_s1 + $0xb0] sm:$0xff]   ;;  %v2454_v31 = vld [vmem:[%s2890_s1 + $0xb8] sm:$0xff]   ;;  %s2804_s12 = scalar_lea.vmem %s2892_s3, %s1911_s29  ;;  %s1915_s18 = sshll.u32 %s2902_s30, 3 }
  0x12   : > { %2292 = vmatpush3.bf16.msra.mxu1 %v2434_v11  ;;  %2181 = vmatprep.subr.bf16.mxu0 %v2435_v12  ;;  %v2455_v32 = vld [vmem:[%s2722_s24] ss:$16 sps:$4 sm:$0xff]   ;;  %v2457_v33 = vld [vmem:[%s2722_s24 + $0x4] ss:$16 sps:$4 sm:$0xff]   ;;  %v2458_v34 = vld [vmem:[%s2722_s24 + $0x8] ss:$16 sps:$4 sm:$0xff]   ;;  %s2813_s14 = scalar_lea.vmem %s2893_s4, %s1915_s18  ;;  %s2818_s17 = scalar_lea.vmem %s2894_s5, %s1915_s18 }
  0x13   : > { %2293 = vmatprep.subr.bf16.mxu1 %v2436_v13  ;;  %v2460_v35 = vld [vmem:[%s2722_s24 + $0xc] ss:$16 sps:$4 sm:$0xff]   ;;  %1080 = vmatprep.mubr.bf16.mxu0 %v2457_v33  ;;  %v2461_v36 = vld [vmem:[%s2722_s24 + $0x24] ss:$16 sps:$4 sm:$0xff]   ;;  %v2465_v38 = vld [vmem:[%s2722_s24 + $0x20] ss:$16 sps:$4 sm:$0xff]  }
  0x14   : > { %1241 = vmatprep.mubr.bf16.mxu1 %v2460_v35  ;;  %v2463_v37 = vld [vmem:[%s2722_s24 + $0x2c] ss:$16 sps:$4 sm:$0xff]   ;;  %v2466_v39 = vld [vmem:[%s2722_s24 + $0x28] ss:$16 sps:$4 sm:$0xff]   ;;  %v2467_v40 = vld [vmem:[%s2722_s24 + $0x44] ss:$16 sps:$4 sm:$0xff]  }
  0x15   : > { %2182 = vmatpush3.bf16.msra.mxu0 %v2437_v14  ;;  %v2469_v41 = vld [vmem:[%s2722_s24 + $0x4c] ss:$16 sps:$4 sm:$0xff]   ;;  %v2471_v42 = vld [vmem:[%s2722_s24 + $0x40] ss:$16 sps:$4 sm:$0xff]   ;;  %v2472_v43 = vld [vmem:[%s2722_s24 + $0x48] ss:$16 sps:$4 sm:$0xff]  }
  0x16   : > { %2294 = vmatpush3.bf16.msra.mxu1 %v2438_v15  ;;  %2183 = vmatprep.subr.bf16.mxu0 %v2439_v16  ;;  %v2473_v44 = vld [vmem:[%s2722_s24 + $0x64] ss:$16 sps:$4 sm:$0xff]   ;;  %v2475_v45 = vld [vmem:[%s2722_s24 + $0x6c] ss:$16 sps:$4 sm:$0xff]   ;;  %v2477_v46 = vld [vmem:[%s2722_s24 + $0x60] ss:$16 sps:$4 sm:$0xff]  }
  0x17   : > { %2295 = vmatprep.subr.bf16.mxu1 %v2440_v17  ;;  %v2478_v47 = vld [vmem:[%s2722_s24 + $0x68] ss:$16 sps:$4 sm:$0xff]   ;;  %v2479_v48 = vld [vmem:[%s2722_s24 + $0x84] ss:$16 sps:$4 sm:$0xff]   ;;  %v2481_v49 = vld [vmem:[%s2722_s24 + $0x8c] ss:$16 sps:$4 sm:$0xff]  }
  0x18   : > { %v2483_v50 = vld [vmem:[%s2722_s24 + $0x80] ss:$16 sps:$4 sm:$0xff]   ;;  %v2484_v51 = vld [vmem:[%s2722_s24 + $0x88] ss:$16 sps:$4 sm:$0xff]   ;;  %v2485_v52 = vld [vmem:[%s2722_s24 + $0xa4] ss:$16 sps:$4 sm:$0xff]  }
  0x19   : > { %2184 = vmatpush3.bf16.msra.mxu0 %v2441_v18  ;;  %v2487_v53 = vld [vmem:[%s2722_s24 + $0xac] ss:$16 sps:$4 sm:$0xff]   ;;  %v2489_v54 = vld [vmem:[%s2722_s24 + $0xa0] ss:$16 sps:$4 sm:$0xff]   ;;  %v2490_v55 = vld [vmem:[%s2722_s24 + $0xa8] ss:$16 sps:$4 sm:$0xff]  }
  0x1a   : > { %2296 = vmatpush3.bf16.msra.mxu1 %v2442_v19  ;;  %2185 = vmatprep.subr.bf16.mxu0 %v2443_v20  ;;  %v2491_v56 = vld [vmem:[%s2722_s24 + $0xc4] ss:$16 sps:$4 sm:$0xff]   ;;  %v2493_v57 = vld [vmem:[%s2722_s24 + $0xcc] ss:$16 sps:$4 sm:$0xff]   ;;  %v2495_v58 = vld [vmem:[%s2722_s24 + $0xc0] ss:$16 sps:$4 sm:$0xff]  }
  0x1b   : > { %2297 = vmatprep.subr.bf16.mxu1 %v2444_v21  ;;  %v2496_v59 = vld [vmem:[%s2722_s24 + $0xc8] ss:$16 sps:$4 sm:$0xff]   ;;  %v2497_v60 = vld [vmem:[%s2722_s24 + $0xe4] ss:$16 sps:$4 sm:$0xff]   ;;  %v2499_v61 = vld [vmem:[%s2722_s24 + $0xec] ss:$16 sps:$4 sm:$0xff]  }
  0x1c   : > { %v2501_v62 = vld [vmem:[%s2722_s24 + $0xe0] ss:$16 sps:$4 sm:$0xff]   ;;  %v2502_v63 = vld [vmem:[%s2722_s24 + $0xe8] ss:$16 sps:$4 sm:$0xff]   ;;  %v2503_v0 = vld [vmem:[%s2722_s24 + $0x104] ss:$16 sps:$4 sm:$0xff]  }
  0x1d   : > { %2186 = vmatpush3.bf16.msra.mxu0 %v2445_v22  ;;  %v2505_v1 = vld [vmem:[%s2722_s24 + $0x10c] ss:$16 sps:$4 sm:$0xff]   ;;  %v2507_v2 = vld [vmem:[%s2722_s24 + $0x100] ss:$16 sps:$4 sm:$0xff]   ;;  %v2508_v3 = vld [vmem:[%s2722_s24 + $0x108] ss:$16 sps:$4 sm:$0xff]  }
  0x1e   : > { %2298 = vmatpush3.bf16.msra.mxu1 %v2446_v23  ;;  %2187 = vmatprep.subr.bf16.mxu0 %v2447_v24  ;;  %v2509_v4 = vld [vmem:[%s2722_s24 + $0x124] ss:$16 sps:$4 sm:$0xff]   ;;  %v2511_v5 = vld [vmem:[%s2722_s24 + $0x12c] ss:$16 sps:$4 sm:$0xff]   ;;  %v2513_v6 = vld [vmem:[%s2722_s24 + $0x120] ss:$16 sps:$4 sm:$0xff]  }
  0x1f   : > { %2299 = vmatprep.subr.bf16.mxu1 %v2448_v25  ;;  %v2514_v7 = vld [vmem:[%s2722_s24 + $0x128] ss:$16 sps:$4 sm:$0xff]   ;;  %v2515_v8 = vld [vmem:[%s2722_s24 + $0x144] ss:$16 sps:$4 sm:$0xff]   ;;  %v2517_v9 = vld [vmem:[%s2722_s24 + $0x14c] ss:$16 sps:$4 sm:$0xff]  }
  0x20   : > { %v2519_v10 = vld [vmem:[%s2722_s24 + $0x140] ss:$16 sps:$4 sm:$0xff]   ;;  %v2520_v11 = vld [vmem:[%s2722_s24 + $0x148] ss:$16 sps:$4 sm:$0xff]   ;;  %v2521_v12 = vld [vmem:[%s2722_s24 + $0x164] ss:$16 sps:$4 sm:$0xff]  }
  0x21   : > { %2188 = vmatpush3.bf16.msra.mxu0 %v2449_v26  ;;  %v2523_v13 = vld [vmem:[%s2722_s24 + $0x16c] ss:$16 sps:$4 sm:$0xff]   ;;  %v2525_v14 = vld [vmem:[%s2722_s24 + $0x160] ss:$16 sps:$4 sm:$0xff]   ;;  %v2526_v15 = vld [vmem:[%s2722_s24 + $0x168] ss:$16 sps:$4 sm:$0xff]  }
  0x22   : > { %2300 = vmatpush3.bf16.msra.mxu1 %v2450_v27  ;;  %2189 = vmatprep.subr.bf16.mxu0 %v2451_v28  ;;  %v2527_v16 = vld [vmem:[%s2722_s24 + $0x184] ss:$16 sps:$4 sm:$0xff]   ;;  %v2529_v17 = vld [vmem:[%s2722_s24 + $0x18c] ss:$16 sps:$4 sm:$0xff]   ;;  %v2531_v18 = vld [vmem:[%s2722_s24 + $0x180] ss:$16 sps:$4 sm:$0xff]  }
  0x23   : > { %2301 = vmatprep.subr.bf16.mxu1 %v2452_v29  ;;  %v2532_v19 = vld [vmem:[%s2722_s24 + $0x188] ss:$16 sps:$4 sm:$0xff]   ;;  %v2533_v20 = vld [vmem:[%s2722_s24 + $0x1a4] ss:$16 sps:$4 sm:$0xff]   ;;  %v2535_v21 = vld [vmem:[%s2722_s24 + $0x1ac] ss:$16 sps:$4 sm:$0xff]  }
  0x24   : > { %v2537_v22 = vld [vmem:[%s2722_s24 + $0x1a0] ss:$16 sps:$4 sm:$0xff]   ;;  %v2538_v23 = vld [vmem:[%s2722_s24 + $0x1a8] ss:$16 sps:$4 sm:$0xff]   ;;  %v2539_v24 = vld [vmem:[%s2722_s24 + $0x1c4] ss:$16 sps:$4 sm:$0xff]  }
  0x25   : > { %2190 = vmatpush3.bf16.msra.mxu0 %v2453_v30  ;;  %v2541_v25 = vld [vmem:[%s2722_s24 + $0x1cc] ss:$16 sps:$4 sm:$0xff]   ;;  %v2543_v26 = vld [vmem:[%s2722_s24 + $0x1c0] ss:$16 sps:$4 sm:$0xff]   ;;  %v2544_v27 = vld [vmem:[%s2722_s24 + $0x1c8] ss:$16 sps:$4 sm:$0xff]  }
  0x26   : > { %2302 = vmatpush3.bf16.msra.mxu1 %v2454_v31  ;;  %v2545_v28 = vld [vmem:[%s2722_s24 + $0x1e4] ss:$16 sps:$4 sm:$0xff]   ;;  %v2547_v29 = vld [vmem:[%s2722_s24 + $0x1ec] ss:$16 sps:$4 sm:$0xff]   ;;  %v2549_v30 = vld [vmem:[%s2722_s24 + $0x1e0] ss:$16 sps:$4 sm:$0xff]  }
  0x27   : > { %v2550_v31 = vld [vmem:[%s2722_s24 + $0x1e8] ss:$16 sps:$4 sm:$0xff]  }
  0x28   : > { %1081 = vmatmul.mubr.bf16.vlgmr.msra.gmra.mrb[0].mxu0 %v2455_v32 }
  0x29   : > { %1242 = vmatmul.mubr.bf16.vlgmr.msra.gmra.mrb[0].mxu1 %v2458_v34  ;;  %1088 = vmatprep.mubr.bf16.mxu0 %v2461_v36 }
  0x2a   : > { %1249 = vmatprep.mubr.bf16.mxu1 %v2463_v37 }
  0x30   : > { %1089 = vmatmul.mubr.bf16.gmra.mrb[4].mxu0 %v2465_v38 }
  0x31   : > { %1250 = vmatmul.mubr.bf16.gmra.mrb[4].mxu1 %v2466_v39  ;;  %1096 = vmatprep.mubr.bf16.mxu0 %v2467_v40  ;;  %v2018_v39 = vld [vmem:[%s2799_s9] sm:$0xff]  }
  0x32   : > { %1257 = vmatprep.mubr.bf16.mxu1 %v2469_v41  ;;  %v2082_v40 = vld [vmem:[%s2804_s12] sm:$0xff]  }
  0x38   : > { %1097 = vmatmul.mubr.bf16.gmra.mrb[8].mxu0 %v2471_v42 }
  0x39   : > { %1258 = vmatmul.mubr.bf16.gmra.mrb[8].mxu1 %v2472_v43  ;;  %1104 = vmatprep.mubr.bf16.mxu0 %v2473_v44 }
  0x3a   : > { %1265 = vmatprep.mubr.bf16.mxu1 %v2475_v45 }
  0x40   : > { %1105 = vmatmul.mubr.bf16.gmra.mrb[12].mxu0 %v2477_v46 }
  0x41   : > { %1266 = vmatmul.mubr.bf16.gmra.mrb[12].mxu1 %v2478_v47  ;;  %1112 = vmatprep.mubr.bf16.mxu0 %v2479_v48  ;;  %v2019_v47 = vunpack.c.l.bf16 %v2018_v39  ;;  %v2083_v48 = vunpack.c.l.bf16 %v2082_v40 }
  0x42   : > { %1273 = vmatprep.mubr.bf16.mxu1 %v2481_v49 }
  0x48   : > { %1113 = vmatmul.mubr.bf16.gmra.mrb[16].mxu0 %v2483_v50 }
  0x49   : > { %1274 = vmatmul.mubr.bf16.gmra.mrb[16].mxu1 %v2484_v51  ;;  %1120 = vmatprep.mubr.bf16.mxu0 %v2485_v52  ;;  %v2020_v51 = vunpack.c.h.bf16 %v2018_v39  ;;  %v2084_v52 = vunpack.c.h.bf16 %v2082_v40 }
  0x4a   : > { %1281 = vmatprep.mubr.bf16.mxu1 %v2487_v53 }
  0x50   : > { %1121 = vmatmul.mubr.bf16.gmra.mrb[20].mxu0 %v2489_v54 }
  0x51   : > { %1282 = vmatmul.mubr.bf16.gmra.mrb[20].mxu1 %v2490_v55  ;;  %1128 = vmatprep.mubr.bf16.mxu0 %v2491_v56 }
  0x52   : > { %1289 = vmatprep.mubr.bf16.mxu1 %v2493_v57 }
  0x58   : > { %1129 = vmatmul.mubr.bf16.gmra.mrb[24].mxu0 %v2495_v58 }
  0x59   : > { %1290 = vmatmul.mubr.bf16.gmra.mrb[24].mxu1 %v2496_v59  ;;  %1136 = vmatprep.mubr.bf16.mxu0 %v2497_v60 }
  0x5a   : > { %1297 = vmatprep.mubr.bf16.mxu1 %v2499_v61 }
  0x60   : > { %1137 = vmatmul.mubr.bf16.gmra.mrb[28].mxu0 %v2501_v62 }
  0x61   : > { %1298 = vmatmul.mubr.bf16.gmra.mrb[28].mxu1 %v2502_v63  ;;  %1144 = vmatprep.mubr.bf16.mxu0 %v2503_v0 }
  0x62   : > { %1305 = vmatprep.mubr.bf16.mxu1 %v2505_v1  ;;  %v2145_v1 = vld [vmem:[%s2799_s9 + $0x8] sm:$0xff]  }
  0x68   : > { %1145 = vmatmul.mubr.bf16.gmra.mrb[32].mxu0 %v2507_v2  ;;  %v2160_v2 = vld [vmem:[%s2804_s12 + $0x8] sm:$0xff]  }
  0x69   : > { %1306 = vmatmul.mubr.bf16.gmra.mrb[32].mxu1 %v2508_v3  ;;  %1152 = vmatprep.mubr.bf16.mxu0 %v2509_v4 }
  0x6a   : > { %1313 = vmatprep.mubr.bf16.mxu1 %v2511_v5 }
  0x70   : > { %1153 = vmatmul.mubr.bf16.gmra.mrb[36].mxu0 %v2513_v6 }
  0x71   : > { %1314 = vmatmul.mubr.bf16.gmra.mrb[36].mxu1 %v2514_v7  ;;  %1160 = vmatprep.mubr.bf16.mxu0 %v2515_v8 }
  0x72   : > { %1321 = vmatprep.mubr.bf16.mxu1 %v2517_v9 }
  0x78   : > { %1161 = vmatmul.mubr.bf16.gmra.mrb[40].mxu0 %v2519_v10 }
  0x79   : > { %1322 = vmatmul.mubr.bf16.gmra.mrb[40].mxu1 %v2520_v11  ;;  %1168 = vmatprep.mubr.bf16.mxu0 %v2521_v12  ;;  %v2023_v11 = vunpack.c.l.bf16 %v2145_v1  ;;  %v2087_v12 = vunpack.c.l.bf16 %v2160_v2 }
  0x7a   : > { %1329 = vmatprep.mubr.bf16.mxu1 %v2523_v13 }
  0x80   : > { %1169 = vmatmul.mubr.bf16.gmra.mrb[44].mxu0 %v2525_v14 }
  0x81   : > { %1330 = vmatmul.mubr.bf16.gmra.mrb[44].mxu1 %v2526_v15  ;;  %1176 = vmatprep.mubr.bf16.mxu0 %v2527_v16  ;;  %v2024_v15 = vunpack.c.h.bf16 %v2145_v1  ;;  %v2088_v16 = vunpack.c.h.bf16 %v2160_v2 }
  0x82   : > { %1337 = vmatprep.mubr.bf16.mxu1 %v2529_v17 }
  0x88   : > { %1177 = vmatmul.mubr.bf16.gmra.mrb[48].mxu0 %v2531_v18 }
  0x89   : > { %1338 = vmatmul.mubr.bf16.gmra.mrb[48].mxu1 %v2532_v19  ;;  %1184 = vmatprep.mubr.bf16.mxu0 %v2533_v20 }
  0x8a   : > { %1345 = vmatprep.mubr.bf16.mxu1 %v2535_v21 }
  0x90   : > { %1185 = vmatmul.mubr.bf16.gmra.mrb[52].mxu0 %v2537_v22 }
  0x91   : > { %1346 = vmatmul.mubr.bf16.gmra.mrb[52].mxu1 %v2538_v23  ;;  %1192 = vmatprep.mubr.bf16.mxu0 %v2539_v24 }
  0x92   : > { %1353 = vmatprep.mubr.bf16.mxu1 %v2541_v25 }
  0x98   : > { %1193 = vmatmul.mubr.bf16.gmra.mrb[56].mxu0 %v2543_v26 }
  0x99   : > { %1354 = vmatmul.mubr.bf16.gmra.mrb[56].mxu1 %v2544_v27  ;;  %1200 = vmatprep.mubr.bf16.mxu0 %v2545_v28 }
  0x9a   : > { %1361 = vmatprep.mubr.bf16.mxu1 %v2547_v29  ;;  %v2146_v29 = vld [vmem:[%s2799_s9 + $0x10] sm:$0xff]  }
  0x9b   : > { %v2027_v39 = vunpack.c.l.bf16 %v2146_v29 }
  0xa0   : > { %1201 = vmatmul.mubr.bf16.gmra.mrb[60].mxu0 %v2549_v30  ;;  %v2161_v30 = vld [vmem:[%s2804_s12 + $0x10] sm:$0xff]  }
  0xa1   : > { %1362 = vmatmul.mubr.bf16.gmra.mrb[60].mxu1 %v2550_v31  ;;  %v2091_v40 = vunpack.c.l.bf16 %v2161_v30 }
  0xfb   : > { %v2191_v32 = vpop.f32.mrb[0].mxu0 }
  0xfc   : > { %v2303_v33 = vpop.f32.mrb[0].mxu1  ;;  %v2192_v34 = vpop.f32.mrb[1].mxu0 }
  0xfd   : > { %v2193_v35 = vadd.f32 %v2192_v34, %v2191_v32  ;;  %v2304_v36 = vpop.f32.mrb[1].mxu1  ;;  %v2194_v37 = vpop.f32.mrb[2].mxu0 }
  0xfe   : > { %v2305_v38 = vadd.f32 %v2304_v36, %v2303_v33  ;;  %v2306_v41 = vpop.f32.mrb[2].mxu1  ;;  %v2195_v42 = vpop.f32.mrb[3].mxu0 }
  0xff   : > { %v2196_v43 = vadd.f32 %v2195_v42, %v2194_v37  ;;  %v2307_v44 = vpop.f32.mrb[3].mxu1 }
 0x100   : > { %v1244_v45 = vadd.f32 %v2305_v38, %v2193_v35  ;;  %v2308_v46 = vadd.f32 %v2307_v44, %v2306_v41  ;;  %v2092_v44 = vunpack.c.h.bf16 %v2161_v30 }
 0x102   : > { %v1469_v49 = vmax.f32 %v1244_v45, 0.0  ;;  %v1247_v50 = vadd.f32 %v2308_v46, %v2196_v43  ;;  %v2028_v43 = vunpack.c.h.bf16 %v2146_v29 }
 0x103   : > { %v2197_v53 = vpop.f32.mrb[4].mxu0 }
 0x104   : > { %v1470_v54 = vmax.f32 %v1247_v50, 0.0  ;;  %v2309_v55 = vpop.f32.mrb[4].mxu1  ;;  %v2198_v56 = vpop.f32.mrb[5].mxu0  ;;  %v1565_v57 = vmul.f32 %v2019_v47, %v1469_v49  ;;  %v1693_v61 = vmul.f32 %v2083_v48, %v1469_v49 }
 0x105   : > { %v2199_v58 = vadd.f32 %v2198_v56, %v2197_v53  ;;  %v2310_v59 = vpop.f32.mrb[5].mxu1  ;;  %v2200_v60 = vpop.f32.mrb[6].mxu0 }
 0x106   : > { %v1566_v62 = vmul.f32 %v2020_v51, %v1470_v54  ;;  %v1694_v63 = vmul.f32 %v2084_v52, %v1470_v54  ;;  %v2311_v0 = vadd.f32 %v2310_v59, %v2309_v55  ;;  %v2312_v3 = vpop.f32.mrb[6].mxu1  ;;  %v2201_v4 = vpop.f32.mrb[7].mxu0 }
 0x107   : > { %v2202_v5 = vadd.f32 %v2201_v4, %v2200_v60  ;;  %v2313_v6 = vpop.f32.mrb[7].mxu1 }
 0x108   : > { %v1597_v7 = vpack.c.bf16 %v1566_v62, %v1565_v57  ;;  %v1725_v8 = vpack.c.bf16 %v1694_v63, %v1693_v61  ;;  %v1252_v9 = vadd.f32 %v2311_v0, %v2199_v58  ;;  %v2314_v10 = vadd.f32 %v2313_v6, %v2312_v3  ;;  %v2147_v57 = vld [vmem:[%s2799_s9 + $0x18] sm:$0xff]  }
 0x109   : > { %v2162_v58 = vld [vmem:[%s2804_s12 + $0x18] sm:$0xff]   ;;  %v2031_v3 = vunpack.c.l.bf16 %v2147_v57 }
 0x10a   : > { %1613 = vst [vmem:[%s2813_s14] sm:$0xff] %v1597_v7  ;;  %1741 = vst [vmem:[%s2818_s17] sm:$0xff] %v1725_v8  ;;  %v1471_v13 = vmax.f32 %v1252_v9, 0.0  ;;  %v1255_v14 = vadd.f32 %v2314_v10, %v2202_v5  ;;  %v2095_v4 = vunpack.c.l.bf16 %v2162_v58  ;;  %v2032_v7 = vunpack.c.h.bf16 %v2147_v57 }
 0x10b   : > { %v2203_v17 = vpop.f32.mrb[8].mxu0  ;;  %v2096_v8 = vunpack.c.h.bf16 %v2162_v58 }
 0x10c   : > { %v1472_v18 = vmax.f32 %v1255_v14, 0.0  ;;  %v2315_v19 = vpop.f32.mrb[8].mxu1  ;;  %v2204_v20 = vpop.f32.mrb[9].mxu0  ;;  %v1567_v21 = vmul.f32 %v2023_v11, %v1471_v13  ;;  %v1695_v25 = vmul.f32 %v2087_v12, %v1471_v13 }
 0x10d   : > { %v2205_v22 = vadd.f32 %v2204_v20, %v2203_v17  ;;  %v2316_v23 = vpop.f32.mrb[9].mxu1  ;;  %v2206_v24 = vpop.f32.mrb[10].mxu0 }
 0x10e   : > { %v1568_v26 = vmul.f32 %v2024_v15, %v1472_v18  ;;  %v1696_v27 = vmul.f32 %v2088_v16, %v1472_v18  ;;  %v2317_v28 = vadd.f32 %v2316_v23, %v2315_v19  ;;  %v2318_v31 = vpop.f32.mrb[10].mxu1  ;;  %v2207_v32 = vpop.f32.mrb[11].mxu0 }
 0x10f   : > { %v2208_v33 = vadd.f32 %v2207_v32, %v2206_v24  ;;  %v2319_v34 = vpop.f32.mrb[11].mxu1 }
 0x110   : > { %v1598_v35 = vpack.c.bf16 %v1568_v26, %v1567_v21  ;;  %v1726_v36 = vpack.c.bf16 %v1696_v27, %v1695_v25  ;;  %v1260_v37 = vadd.f32 %v2317_v28, %v2205_v22  ;;  %v2320_v38 = vadd.f32 %v2319_v34, %v2318_v31  ;;  %v2148_v21 = vld [vmem:[%s2799_s9 + $0x20] sm:$0xff]  }
 0x111   : > { %v2163_v22 = vld [vmem:[%s2804_s12 + $0x20] sm:$0xff]   ;;  %v2035_v31 = vunpack.c.l.bf16 %v2148_v21 }
 0x112   : > { %1614 = vst [vmem:[%s2813_s14 + $0x8] sm:$0xff] %v1598_v35  ;;  %1742 = vst [vmem:[%s2818_s17 + $0x8] sm:$0xff] %v1726_v36  ;;  %v1473_v41 = vmax.f32 %v1260_v37, 0.0  ;;  %v1263_v42 = vadd.f32 %v2320_v38, %v2208_v33  ;;  %v2099_v32 = vunpack.c.l.bf16 %v2163_v22  ;;  %v2036_v35 = vunpack.c.h.bf16 %v2148_v21 }
 0x113   : > { %v2209_v45 = vpop.f32.mrb[12].mxu0  ;;  %v2100_v36 = vunpack.c.h.bf16 %v2163_v22 }
 0x114   : > { %v1474_v46 = vmax.f32 %v1263_v42, 0.0  ;;  %v2321_v47 = vpop.f32.mrb[12].mxu1  ;;  %v2210_v48 = vpop.f32.mrb[13].mxu0  ;;  %v1569_v49 = vmul.f32 %v2027_v39, %v1473_v41  ;;  %v1697_v53 = vmul.f32 %v2091_v40, %v1473_v41 }
 0x115   : > { %v2211_v50 = vadd.f32 %v2210_v48, %v2209_v45  ;;  %v2322_v51 = vpop.f32.mrb[13].mxu1  ;;  %v2212_v52 = vpop.f32.mrb[14].mxu0 }
 0x116   : > { %v1570_v54 = vmul.f32 %v2028_v43, %v1474_v46  ;;  %v1698_v55 = vmul.f32 %v2092_v44, %v1474_v46  ;;  %v2323_v56 = vadd.f32 %v2322_v51, %v2321_v47  ;;  %v2324_v59 = vpop.f32.mrb[14].mxu1  ;;  %v2213_v60 = vpop.f32.mrb[15].mxu0 }
 0x117   : > { %v2214_v61 = vadd.f32 %v2213_v60, %v2212_v52  ;;  %v2325_v62 = vpop.f32.mrb[15].mxu1 }
 0x118   : > { %v1599_v63 = vpack.c.bf16 %v1570_v54, %v1569_v49  ;;  %v1727_v0 = vpack.c.bf16 %v1698_v55, %v1697_v53  ;;  %v1268_v1 = vadd.f32 %v2323_v56, %v2211_v50  ;;  %v2326_v2 = vadd.f32 %v2325_v62, %v2324_v59  ;;  %v2149_v49 = vld [vmem:[%s2799_s9 + $0x28] sm:$0xff]  }
 0x119   : > { %v2164_v50 = vld [vmem:[%s2804_s12 + $0x28] sm:$0xff]   ;;  %v2039_v59 = vunpack.c.l.bf16 %v2149_v49 }
 0x11a   : > { %1615 = vst [vmem:[%s2813_s14 + $0x10] sm:$0xff] %v1599_v63  ;;  %1743 = vst [vmem:[%s2818_s17 + $0x10] sm:$0xff] %v1727_v0  ;;  %v1475_v5 = vmax.f32 %v1268_v1, 0.0  ;;  %v1271_v6 = vadd.f32 %v2326_v2, %v2214_v61  ;;  %v2103_v60 = vunpack.c.l.bf16 %v2164_v50  ;;  %v2040_v63 = vunpack.c.h.bf16 %v2149_v49 }
 0x11b   : > { %v2215_v9 = vpop.f32.mrb[16].mxu0  ;;  %v2104_v0 = vunpack.c.h.bf16 %v2164_v50 }
 0x11c   : > { %v1476_v10 = vmax.f32 %v1271_v6, 0.0  ;;  %v2327_v11 = vpop.f32.mrb[16].mxu1  ;;  %v2216_v12 = vpop.f32.mrb[17].mxu0  ;;  %v1571_v13 = vmul.f32 %v2031_v3, %v1475_v5  ;;  %v1699_v17 = vmul.f32 %v2095_v4, %v1475_v5 }
 0x11d   : > { %v2217_v14 = vadd.f32 %v2216_v12, %v2215_v9  ;;  %v2328_v15 = vpop.f32.mrb[17].mxu1  ;;  %v2218_v16 = vpop.f32.mrb[18].mxu0 }
 0x11e   : > { %v1572_v18 = vmul.f32 %v2032_v7, %v1476_v10  ;;  %v1700_v19 = vmul.f32 %v2096_v8, %v1476_v10  ;;  %v2329_v20 = vadd.f32 %v2328_v15, %v2327_v11  ;;  %v2330_v23 = vpop.f32.mrb[18].mxu1  ;;  %v2219_v24 = vpop.f32.mrb[19].mxu0 }
 0x11f   : > { %v2220_v25 = vadd.f32 %v2219_v24, %v2218_v16  ;;  %v2331_v26 = vpop.f32.mrb[19].mxu1 }
 0x120   : > { %v1600_v27 = vpack.c.bf16 %v1572_v18, %v1571_v13  ;;  %v1728_v28 = vpack.c.bf16 %v1700_v19, %v1699_v17  ;;  %v1276_v29 = vadd.f32 %v2329_v20, %v2217_v14  ;;  %v2332_v30 = vadd.f32 %v2331_v26, %v2330_v23  ;;  %v2150_v13 = vld [vmem:[%s2799_s9 + $0x30] sm:$0xff]  }
 0x121   : > { %v2165_v14 = vld [vmem:[%s2804_s12 + $0x30] sm:$0xff]   ;;  %v2043_v23 = vunpack.c.l.bf16 %v2150_v13 }
 0x122   : > { %1616 = vst [vmem:[%s2813_s14 + $0x18] sm:$0xff] %v1600_v27  ;;  %1744 = vst [vmem:[%s2818_s17 + $0x18] sm:$0xff] %v1728_v28  ;;  %v1477_v33 = vmax.f32 %v1276_v29, 0.0  ;;  %v1279_v34 = vadd.f32 %v2332_v30, %v2220_v25  ;;  %v2107_v24 = vunpack.c.l.bf16 %v2165_v14  ;;  %v2044_v27 = vunpack.c.h.bf16 %v2150_v13 }
 0x123   : > { %v2221_v37 = vpop.f32.mrb[20].mxu0  ;;  %v2108_v28 = vunpack.c.h.bf16 %v2165_v14 }
 0x124   : > { %v1478_v38 = vmax.f32 %v1279_v34, 0.0  ;;  %v2333_v39 = vpop.f32.mrb[20].mxu1  ;;  %v2222_v40 = vpop.f32.mrb[21].mxu0  ;;  %v1573_v41 = vmul.f32 %v2035_v31, %v1477_v33  ;;  %v1701_v45 = vmul.f32 %v2099_v32, %v1477_v33 }
 0x125   : > { %v2223_v42 = vadd.f32 %v2222_v40, %v2221_v37  ;;  %v2334_v43 = vpop.f32.mrb[21].mxu1  ;;  %v2224_v44 = vpop.f32.mrb[22].mxu0 }
 0x126   : > { %v1574_v46 = vmul.f32 %v2036_v35, %v1478_v38  ;;  %v1702_v47 = vmul.f32 %v2100_v36, %v1478_v38  ;;  %v2335_v48 = vadd.f32 %v2334_v43, %v2333_v39  ;;  %v2336_v51 = vpop.f32.mrb[22].mxu1  ;;  %v2225_v52 = vpop.f32.mrb[23].mxu0 }
 0x127   : > { %v2226_v53 = vadd.f32 %v2225_v52, %v2224_v44  ;;  %v2337_v54 = vpop.f32.mrb[23].mxu1 }
 0x128   : > { %v1601_v55 = vpack.c.bf16 %v1574_v46, %v1573_v41  ;;  %v1729_v56 = vpack.c.bf16 %v1702_v47, %v1701_v45  ;;  %v1284_v57 = vadd.f32 %v2335_v48, %v2223_v42  ;;  %v2338_v58 = vadd.f32 %v2337_v54, %v2336_v51  ;;  %v2151_v41 = vld [vmem:[%s2799_s9 + $0x38] sm:$0xff]  }
 0x129   : > { %v2166_v42 = vld [vmem:[%s2804_s12 + $0x38] sm:$0xff]   ;;  %v2047_v51 = vunpack.c.l.bf16 %v2151_v41 }
 0x12a   : > { %1617 = vst [vmem:[%s2813_s14 + $0x20] sm:$0xff] %v1601_v55  ;;  %1745 = vst [vmem:[%s2818_s17 + $0x20] sm:$0xff] %v1729_v56  ;;  %v1479_v61 = vmax.f32 %v1284_v57, 0.0  ;;  %v1287_v62 = vadd.f32 %v2338_v58, %v2226_v53  ;;  %v2111_v52 = vunpack.c.l.bf16 %v2166_v42  ;;  %v2048_v55 = vunpack.c.h.bf16 %v2151_v41 }
 0x12b   : > { %v2227_v1 = vpop.f32.mrb[24].mxu0  ;;  %v2112_v56 = vunpack.c.h.bf16 %v2166_v42 }
 0x12c   : > { %v1480_v2 = vmax.f32 %v1287_v62, 0.0  ;;  %v2339_v3 = vpop.f32.mrb[24].mxu1  ;;  %v2228_v4 = vpop.f32.mrb[25].mxu0  ;;  %v1575_v5 = vmul.f32 %v2039_v59, %v1479_v61  ;;  %v1703_v9 = vmul.f32 %v2103_v60, %v1479_v61 }
 0x12d   : > { %v2229_v6 = vadd.f32 %v2228_v4, %v2227_v1  ;;  %v2340_v7 = vpop.f32.mrb[25].mxu1  ;;  %v2230_v8 = vpop.f32.mrb[26].mxu0 }
 0x12e   : > { %v1576_v10 = vmul.f32 %v2040_v63, %v1480_v2  ;;  %v1704_v11 = vmul.f32 %v2104_v0, %v1480_v2  ;;  %v2341_v12 = vadd.f32 %v2340_v7, %v2339_v3  ;;  %v2342_v15 = vpop.f32.mrb[26].mxu1  ;;  %v2231_v16 = vpop.f32.mrb[27].mxu0 }
 0x12f   : > { %v2232_v17 = vadd.f32 %v2231_v16, %v2230_v8  ;;  %v2343_v18 = vpop.f32.mrb[27].mxu1 }
 0x130   : > { %v1602_v19 = vpack.c.bf16 %v1576_v10, %v1575_v5  ;;  %v1730_v20 = vpack.c.bf16 %v1704_v11, %v1703_v9  ;;  %v1292_v21 = vadd.f32 %v2341_v12, %v2229_v6  ;;  %v2344_v22 = vadd.f32 %v2343_v18, %v2342_v15  ;;  %v2152_v5 = vld [vmem:[%s2799_s9 + $0x40] sm:$0xff]  }
 0x131   : > { %v2167_v6 = vld [vmem:[%s2804_s12 + $0x40] sm:$0xff]   ;;  %v2051_v15 = vunpack.c.l.bf16 %v2152_v5 }
 0x132   : > { %1618 = vst [vmem:[%s2813_s14 + $0x28] sm:$0xff] %v1602_v19  ;;  %1746 = vst [vmem:[%s2818_s17 + $0x28] sm:$0xff] %v1730_v20  ;;  %v1481_v25 = vmax.f32 %v1292_v21, 0.0  ;;  %v1295_v26 = vadd.f32 %v2344_v22, %v2232_v17  ;;  %v2115_v16 = vunpack.c.l.bf16 %v2167_v6  ;;  %v2052_v19 = vunpack.c.h.bf16 %v2152_v5 }
 0x133   : > { %v2233_v29 = vpop.f32.mrb[28].mxu0  ;;  %v2116_v20 = vunpack.c.h.bf16 %v2167_v6 }
 0x134   : > { %v1482_v30 = vmax.f32 %v1295_v26, 0.0  ;;  %v2345_v31 = vpop.f32.mrb[28].mxu1  ;;  %v2234_v32 = vpop.f32.mrb[29].mxu0  ;;  %v1577_v33 = vmul.f32 %v2043_v23, %v1481_v25  ;;  %v1705_v37 = vmul.f32 %v2107_v24, %v1481_v25 }
 0x135   : > { %v2235_v34 = vadd.f32 %v2234_v32, %v2233_v29  ;;  %v2346_v35 = vpop.f32.mrb[29].mxu1  ;;  %v2236_v36 = vpop.f32.mrb[30].mxu0 }
 0x136   : > { %v1578_v38 = vmul.f32 %v2044_v27, %v1482_v30  ;;  %v1706_v39 = vmul.f32 %v2108_v28, %v1482_v30  ;;  %v2347_v40 = vadd.f32 %v2346_v35, %v2345_v31  ;;  %v2348_v43 = vpop.f32.mrb[30].mxu1  ;;  %v2237_v44 = vpop.f32.mrb[31].mxu0 }
 0x137   : > { %v2238_v45 = vadd.f32 %v2237_v44, %v2236_v36  ;;  %v2349_v46 = vpop.f32.mrb[31].mxu1 }
 0x138   : > { %v1603_v47 = vpack.c.bf16 %v1578_v38, %v1577_v33  ;;  %v1731_v48 = vpack.c.bf16 %v1706_v39, %v1705_v37  ;;  %v1300_v49 = vadd.f32 %v2347_v40, %v2235_v34  ;;  %v2350_v50 = vadd.f32 %v2349_v46, %v2348_v43  ;;  %v2153_v33 = vld [vmem:[%s2799_s9 + $0x48] sm:$0xff]  }
 0x139   : > { %v2168_v34 = vld [vmem:[%s2804_s12 + $0x48] sm:$0xff]   ;;  %v2055_v43 = vunpack.c.l.bf16 %v2153_v33 }
 0x13a   : > { %1619 = vst [vmem:[%s2813_s14 + $0x30] sm:$0xff] %v1603_v47  ;;  %1747 = vst [vmem:[%s2818_s17 + $0x30] sm:$0xff] %v1731_v48  ;;  %v1483_v53 = vmax.f32 %v1300_v49, 0.0  ;;  %v1303_v54 = vadd.f32 %v2350_v50, %v2238_v45  ;;  %v2119_v44 = vunpack.c.l.bf16 %v2168_v34  ;;  %v2056_v47 = vunpack.c.h.bf16 %v2153_v33 }
 0x13b   : > { %v2239_v57 = vpop.f32.mrb[32].mxu0  ;;  %v2120_v48 = vunpack.c.h.bf16 %v2168_v34 }
 0x13c   : > { %v1484_v58 = vmax.f32 %v1303_v54, 0.0  ;;  %v2351_v59 = vpop.f32.mrb[32].mxu1  ;;  %v2240_v60 = vpop.f32.mrb[33].mxu0  ;;  %v1579_v61 = vmul.f32 %v2047_v51, %v1483_v53  ;;  %v1707_v1 = vmul.f32 %v2111_v52, %v1483_v53 }
 0x13d   : > { %v2241_v62 = vadd.f32 %v2240_v60, %v2239_v57  ;;  %v2352_v63 = vpop.f32.mrb[33].mxu1  ;;  %v2242_v0 = vpop.f32.mrb[34].mxu0 }
 0x13e   : > { %v1580_v2 = vmul.f32 %v2048_v55, %v1484_v58  ;;  %v1708_v3 = vmul.f32 %v2112_v56, %v1484_v58  ;;  %v2353_v4 = vadd.f32 %v2352_v63, %v2351_v59  ;;  %v2354_v7 = vpop.f32.mrb[34].mxu1  ;;  %v2243_v8 = vpop.f32.mrb[35].mxu0 }
 0x13f   : > { %v2244_v9 = vadd.f32 %v2243_v8, %v2242_v0  ;;  %v2355_v10 = vpop.f32.mrb[35].mxu1 }
 0x140   : > { %v1604_v11 = vpack.c.bf16 %v1580_v2, %v1579_v61  ;;  %v1732_v12 = vpack.c.bf16 %v1708_v3, %v1707_v1  ;;  %v1308_v13 = vadd.f32 %v2353_v4, %v2241_v62  ;;  %v2356_v14 = vadd.f32 %v2355_v10, %v2354_v7  ;;  %v2154_v61 = vld [vmem:[%s2799_s9 + $0x50] sm:$0xff]  }
 0x141   : > { %v2169_v62 = vld [vmem:[%s2804_s12 + $0x50] sm:$0xff]   ;;  %v2059_v7 = vunpack.c.l.bf16 %v2154_v61 }
 0x142   : > { %1620 = vst [vmem:[%s2813_s14 + $0x38] sm:$0xff] %v1604_v11  ;;  %1748 = vst [vmem:[%s2818_s17 + $0x38] sm:$0xff] %v1732_v12  ;;  %v1485_v17 = vmax.f32 %v1308_v13, 0.0  ;;  %v1311_v18 = vadd.f32 %v2356_v14, %v2244_v9  ;;  %v2123_v8 = vunpack.c.l.bf16 %v2169_v62  ;;  %v2060_v11 = vunpack.c.h.bf16 %v2154_v61 }
 0x143   : > { %v2245_v21 = vpop.f32.mrb[36].mxu0  ;;  %v2124_v12 = vunpack.c.h.bf16 %v2169_v62 }
 0x144   : > { %v1486_v22 = vmax.f32 %v1311_v18, 0.0  ;;  %v2357_v23 = vpop.f32.mrb[36].mxu1  ;;  %v2246_v24 = vpop.f32.mrb[37].mxu0  ;;  %v1581_v25 = vmul.f32 %v2051_v15, %v1485_v17  ;;  %v1709_v29 = vmul.f32 %v2115_v16, %v1485_v17 }
 0x145   : > { %v2247_v26 = vadd.f32 %v2246_v24, %v2245_v21  ;;  %v2358_v27 = vpop.f32.mrb[37].mxu1  ;;  %v2248_v28 = vpop.f32.mrb[38].mxu0 }
 0x146   : > { %v1582_v30 = vmul.f32 %v2052_v19, %v1486_v22  ;;  %v1710_v31 = vmul.f32 %v2116_v20, %v1486_v22  ;;  %v2359_v32 = vadd.f32 %v2358_v27, %v2357_v23  ;;  %v2360_v35 = vpop.f32.mrb[38].mxu1  ;;  %v2249_v36 = vpop.f32.mrb[39].mxu0 }
 0x147   : > { %v2250_v37 = vadd.f32 %v2249_v36, %v2248_v28  ;;  %v2361_v38 = vpop.f32.mrb[39].mxu1 }
 0x148   : > { %v1605_v39 = vpack.c.bf16 %v1582_v30, %v1581_v25  ;;  %v1733_v40 = vpack.c.bf16 %v1710_v31, %v1709_v29  ;;  %v1316_v41 = vadd.f32 %v2359_v32, %v2247_v26  ;;  %v2362_v42 = vadd.f32 %v2361_v38, %v2360_v35  ;;  %v2155_v25 = vld [vmem:[%s2799_s9 + $0x58] sm:$0xff]  }
 0x149   : > { %v2170_v26 = vld [vmem:[%s2804_s12 + $0x58] sm:$0xff]   ;;  %v2063_v35 = vunpack.c.l.bf16 %v2155_v25 }
 0x14a   : > { %1621 = vst [vmem:[%s2813_s14 + $0x40] sm:$0xff] %v1605_v39  ;;  %1749 = vst [vmem:[%s2818_s17 + $0x40] sm:$0xff] %v1733_v40  ;;  %v1487_v45 = vmax.f32 %v1316_v41, 0.0  ;;  %v1319_v46 = vadd.f32 %v2362_v42, %v2250_v37  ;;  %v2127_v36 = vunpack.c.l.bf16 %v2170_v26  ;;  %v2064_v39 = vunpack.c.h.bf16 %v2155_v25 }
 0x14b   : > { %v2251_v49 = vpop.f32.mrb[40].mxu0  ;;  %v2128_v40 = vunpack.c.h.bf16 %v2170_v26 }
 0x14c   : > { %v1488_v50 = vmax.f32 %v1319_v46, 0.0  ;;  %v2363_v51 = vpop.f32.mrb[40].mxu1  ;;  %v2252_v52 = vpop.f32.mrb[41].mxu0  ;;  %v1583_v53 = vmul.f32 %v2055_v43, %v1487_v45  ;;  %v1711_v57 = vmul.f32 %v2119_v44, %v1487_v45 }
 0x14d   : > { %v2253_v54 = vadd.f32 %v2252_v52, %v2251_v49  ;;  %v2364_v55 = vpop.f32.mrb[41].mxu1  ;;  %v2254_v56 = vpop.f32.mrb[42].mxu0 }
 0x14e   : > { %v1584_v58 = vmul.f32 %v2056_v47, %v1488_v50  ;;  %v1712_v59 = vmul.f32 %v2120_v48, %v1488_v50  ;;  %v2365_v60 = vadd.f32 %v2364_v55, %v2363_v51  ;;  %v2366_v63 = vpop.f32.mrb[42].mxu1  ;;  %v2255_v0 = vpop.f32.mrb[43].mxu0 }
 0x14f   : > { %v2256_v1 = vadd.f32 %v2255_v0, %v2254_v56  ;;  %v2367_v2 = vpop.f32.mrb[43].mxu1 }
 0x150   : > { %v1606_v3 = vpack.c.bf16 %v1584_v58, %v1583_v53  ;;  %v1734_v4 = vpack.c.bf16 %v1712_v59, %v1711_v57  ;;  %v1324_v5 = vadd.f32 %v2365_v60, %v2253_v54  ;;  %v2368_v6 = vadd.f32 %v2367_v2, %v2366_v63  ;;  %v2156_v53 = vld [vmem:[%s2799_s9 + $0x60] sm:$0xff]  }
 0x151   : > { %v2171_v54 = vld [vmem:[%s2804_s12 + $0x60] sm:$0xff]   ;;  %v2067_v63 = vunpack.c.l.bf16 %v2156_v53 }
 0x152   : > { %1622 = vst [vmem:[%s2813_s14 + $0x48] sm:$0xff] %v1606_v3  ;;  %1750 = vst [vmem:[%s2818_s17 + $0x48] sm:$0xff] %v1734_v4  ;;  %v1489_v9 = vmax.f32 %v1324_v5, 0.0  ;;  %v1327_v10 = vadd.f32 %v2368_v6, %v2256_v1  ;;  %v2131_v0 = vunpack.c.l.bf16 %v2171_v54  ;;  %v2068_v3 = vunpack.c.h.bf16 %v2156_v53 }
 0x153   : > { %v2257_v13 = vpop.f32.mrb[44].mxu0  ;;  %v2132_v4 = vunpack.c.h.bf16 %v2171_v54 }
 0x154   : > { %v1490_v14 = vmax.f32 %v1327_v10, 0.0  ;;  %v2369_v15 = vpop.f32.mrb[44].mxu1  ;;  %v2258_v16 = vpop.f32.mrb[45].mxu0  ;;  %v1585_v17 = vmul.f32 %v2059_v7, %v1489_v9  ;;  %v1713_v21 = vmul.f32 %v2123_v8, %v1489_v9 }
 0x155   : > { %v2259_v18 = vadd.f32 %v2258_v16, %v2257_v13  ;;  %v2370_v19 = vpop.f32.mrb[45].mxu1  ;;  %v2260_v20 = vpop.f32.mrb[46].mxu0 }
 0x156   : > { %v1586_v22 = vmul.f32 %v2060_v11, %v1490_v14  ;;  %v1714_v23 = vmul.f32 %v2124_v12, %v1490_v14  ;;  %v2371_v24 = vadd.f32 %v2370_v19, %v2369_v15  ;;  %v2372_v27 = vpop.f32.mrb[46].mxu1  ;;  %v2261_v28 = vpop.f32.mrb[47].mxu0 }
 0x157   : > { %v2262_v29 = vadd.f32 %v2261_v28, %v2260_v20  ;;  %v2373_v30 = vpop.f32.mrb[47].mxu1 }
 0x158   : > { %v1607_v31 = vpack.c.bf16 %v1586_v22, %v1585_v17  ;;  %v1735_v32 = vpack.c.bf16 %v1714_v23, %v1713_v21  ;;  %v1332_v33 = vadd.f32 %v2371_v24, %v2259_v18  ;;  %v2374_v34 = vadd.f32 %v2373_v30, %v2372_v27  ;;  %v2157_v17 = vld [vmem:[%s2799_s9 + $0x68] sm:$0xff]  }
 0x159   : > { %v2172_v18 = vld [vmem:[%s2804_s12 + $0x68] sm:$0xff]   ;;  %v2071_v27 = vunpack.c.l.bf16 %v2157_v17 }
 0x15a   : > { %1623 = vst [vmem:[%s2813_s14 + $0x50] sm:$0xff] %v1607_v31  ;;  %1751 = vst [vmem:[%s2818_s17 + $0x50] sm:$0xff] %v1735_v32  ;;  %v1491_v37 = vmax.f32 %v1332_v33, 0.0  ;;  %v1335_v38 = vadd.f32 %v2374_v34, %v2262_v29  ;;  %v2135_v28 = vunpack.c.l.bf16 %v2172_v18  ;;  %v2072_v31 = vunpack.c.h.bf16 %v2157_v17 }
 0x15b   : > { %v2263_v41 = vpop.f32.mrb[48].mxu0  ;;  %v2136_v32 = vunpack.c.h.bf16 %v2172_v18 }
 0x15c   : > { %v1492_v42 = vmax.f32 %v1335_v38, 0.0  ;;  %v2375_v43 = vpop.f32.mrb[48].mxu1  ;;  %v2264_v44 = vpop.f32.mrb[49].mxu0  ;;  %v1587_v45 = vmul.f32 %v2063_v35, %v1491_v37  ;;  %v1715_v49 = vmul.f32 %v2127_v36, %v1491_v37 }
 0x15d   : > { %v2265_v46 = vadd.f32 %v2264_v44, %v2263_v41  ;;  %v2376_v47 = vpop.f32.mrb[49].mxu1  ;;  %v2266_v48 = vpop.f32.mrb[50].mxu0 }
 0x15e   : > { %v1588_v50 = vmul.f32 %v2064_v39, %v1492_v42  ;;  %v1716_v51 = vmul.f32 %v2128_v40, %v1492_v42  ;;  %v2377_v52 = vadd.f32 %v2376_v47, %v2375_v43  ;;  %v2378_v55 = vpop.f32.mrb[50].mxu1  ;;  %v2267_v56 = vpop.f32.mrb[51].mxu0 }
 0x15f   : > { %v2268_v57 = vadd.f32 %v2267_v56, %v2266_v48  ;;  %v2379_v58 = vpop.f32.mrb[51].mxu1 }
 0x160   : > { %v1608_v59 = vpack.c.bf16 %v1588_v50, %v1587_v45  ;;  %v1736_v60 = vpack.c.bf16 %v1716_v51, %v1715_v49  ;;  %v1340_v61 = vadd.f32 %v2377_v52, %v2265_v46  ;;  %v2380_v62 = vadd.f32 %v2379_v58, %v2378_v55  ;;  %v2158_v45 = vld [vmem:[%s2799_s9 + $0x70] sm:$0xff]  }
 0x161   : > { %v2173_v46 = vld [vmem:[%s2804_s12 + $0x70] sm:$0xff]   ;;  %v2075_v55 = vunpack.c.l.bf16 %v2158_v45 }
 0x162   : > { %1624 = vst [vmem:[%s2813_s14 + $0x58] sm:$0xff] %v1608_v59  ;;  %1752 = vst [vmem:[%s2818_s17 + $0x58] sm:$0xff] %v1736_v60  ;;  %v1493_v1 = vmax.f32 %v1340_v61, 0.0  ;;  %v1343_v2 = vadd.f32 %v2380_v62, %v2268_v57  ;;  %v2139_v56 = vunpack.c.l.bf16 %v2173_v46  ;;  %v2076_v59 = vunpack.c.h.bf16 %v2158_v45 }
 0x163   : > { %v2269_v5 = vpop.f32.mrb[52].mxu0  ;;  %v2140_v60 = vunpack.c.h.bf16 %v2173_v46 }
 0x164   : > { %v1494_v6 = vmax.f32 %v1343_v2, 0.0  ;;  %v2381_v7 = vpop.f32.mrb[52].mxu1  ;;  %v2270_v8 = vpop.f32.mrb[53].mxu0  ;;  %v1589_v9 = vmul.f32 %v2067_v63, %v1493_v1  ;;  %v1717_v13 = vmul.f32 %v2131_v0, %v1493_v1 }
 0x165   : > { %v2271_v10 = vadd.f32 %v2270_v8, %v2269_v5  ;;  %v2382_v11 = vpop.f32.mrb[53].mxu1  ;;  %v2272_v12 = vpop.f32.mrb[54].mxu0 }
 0x166   : > { %v1590_v14 = vmul.f32 %v2068_v3, %v1494_v6  ;;  %v1718_v15 = vmul.f32 %v2132_v4, %v1494_v6  ;;  %v2383_v16 = vadd.f32 %v2382_v11, %v2381_v7  ;;  %v2384_v19 = vpop.f32.mrb[54].mxu1  ;;  %v2273_v20 = vpop.f32.mrb[55].mxu0 }
 0x167   : > { %v2274_v21 = vadd.f32 %v2273_v20, %v2272_v12  ;;  %v2385_v22 = vpop.f32.mrb[55].mxu1 }
 0x168   : > { %v1609_v23 = vpack.c.bf16 %v1590_v14, %v1589_v9  ;;  %v1737_v24 = vpack.c.bf16 %v1718_v15, %v1717_v13  ;;  %v1348_v25 = vadd.f32 %v2383_v16, %v2271_v10  ;;  %v2386_v26 = vadd.f32 %v2385_v22, %v2384_v19  ;;  %v2159_v9 = vld [vmem:[%s2799_s9 + $0x78] sm:$0xff]  }
 0x169   : > { %v2174_v10 = vld [vmem:[%s2804_s12 + $0x78] sm:$0xff]   ;;  %v2079_v19 = vunpack.c.l.bf16 %v2159_v9 }
 0x16a   : > { %1625 = vst [vmem:[%s2813_s14 + $0x60] sm:$0xff] %v1609_v23  ;;  %1753 = vst [vmem:[%s2818_s17 + $0x60] sm:$0xff] %v1737_v24  ;;  %v1495_v29 = vmax.f32 %v1348_v25, 0.0  ;;  %v1351_v30 = vadd.f32 %v2386_v26, %v2274_v21  ;;  %v2143_v20 = vunpack.c.l.bf16 %v2174_v10  ;;  %v2080_v23 = vunpack.c.h.bf16 %v2159_v9 }
 0x16b   : > { %v2275_v33 = vpop.f32.mrb[56].mxu0  ;;  %v2144_v24 = vunpack.c.h.bf16 %v2174_v10 }
 0x16c   : > { %v1496_v34 = vmax.f32 %v1351_v30, 0.0  ;;  %v2387_v35 = vpop.f32.mrb[56].mxu1  ;;  %v2276_v36 = vpop.f32.mrb[57].mxu0  ;;  %v1591_v37 = vmul.f32 %v2071_v27, %v1495_v29  ;;  %v1719_v41 = vmul.f32 %v2135_v28, %v1495_v29 }
 0x16d   : > { %v2277_v38 = vadd.f32 %v2276_v36, %v2275_v33  ;;  %v2388_v39 = vpop.f32.mrb[57].mxu1  ;;  %v2278_v40 = vpop.f32.mrb[58].mxu0 }
 0x16e   : > { %v1592_v42 = vmul.f32 %v2072_v31, %v1496_v34  ;;  %v1720_v43 = vmul.f32 %v2136_v32, %v1496_v34  ;;  %v2389_v44 = vadd.f32 %v2388_v39, %v2387_v35  ;;  %v2390_v47 = vpop.f32.mrb[58].mxu1  ;;  %v2279_v48 = vpop.f32.mrb[59].mxu0 }
 0x16f   : > { %v2280_v49 = vadd.f32 %v2279_v48, %v2278_v40  ;;  %v2391_v50 = vpop.f32.mrb[59].mxu1 }
 0x170   : > { %v1610_v51 = vpack.c.bf16 %v1592_v42, %v1591_v37  ;;  %v1738_v52 = vpack.c.bf16 %v1720_v43, %v1719_v41  ;;  %v1356_v53 = vadd.f32 %v2389_v44, %v2277_v38  ;;  %v2392_v54 = vadd.f32 %v2391_v50, %v2390_v47 }
 0x172   : > { %1626 = vst [vmem:[%s2813_s14 + $0x68] sm:$0xff] %v1610_v51  ;;  %1754 = vst [vmem:[%s2818_s17 + $0x68] sm:$0xff] %v1738_v52  ;;  %v1497_v57 = vmax.f32 %v1356_v53, 0.0  ;;  %v1359_v58 = vadd.f32 %v2392_v54, %v2280_v49 }
 0x173   : > { %v2281_v61 = vpop.f32.mrb[60].mxu0 }
 0x174   : > { %v1498_v62 = vmax.f32 %v1359_v58, 0.0  ;;  %v2393_v63 = vpop.f32.mrb[60].mxu1  ;;  %v2282_v0 = vpop.f32.mrb[61].mxu0  ;;  %v1593_v1 = vmul.f32 %v2075_v55, %v1497_v57  ;;  %v1721_v5 = vmul.f32 %v2139_v56, %v1497_v57 }
 0x175   : > { %v2283_v2 = vadd.f32 %v2282_v0, %v2281_v61  ;;  %v2394_v3 = vpop.f32.mrb[61].mxu1  ;;  %v2284_v4 = vpop.f32.mrb[62].mxu0 }
 0x176   : > { %v1594_v6 = vmul.f32 %v2076_v59, %v1498_v62  ;;  %v1722_v7 = vmul.f32 %v2140_v60, %v1498_v62  ;;  %v2395_v8 = vadd.f32 %v2394_v3, %v2393_v63  ;;  %v2396_v11 = vpop.f32.mrb[62].mxu1  ;;  %v2285_v12 = vpop.f32.mrb[63].mxu0 }
 0x177   : > { %v2286_v13 = vadd.f32 %v2285_v12, %v2284_v4  ;;  %v2397_v14 = vpop.f32.mrb[63].mxu1 }
 0x178   : > { %v1611_v15 = vpack.c.bf16 %v1594_v6, %v1593_v1  ;;  %v1739_v16 = vpack.c.bf16 %v1722_v7, %v1721_v5  ;;  %v1364_v17 = vadd.f32 %v2395_v8, %v2283_v2  ;;  %v2398_v18 = vadd.f32 %v2397_v14, %v2396_v11 }
 0x17a   : > { %1627 = vst [vmem:[%s2813_s14 + $0x70] sm:$0xff] %v1611_v15  ;;  %1755 = vst [vmem:[%s2818_s17 + $0x70] sm:$0xff] %v1739_v16  ;;  %v1499_v21 = vmax.f32 %v1364_v17, 0.0  ;;  %v1367_v22 = vadd.f32 %v2398_v18, %v2286_v13 }
 0x17c   : > { %v1500_v25 = vmax.f32 %v1367_v22, 0.0  ;;  %v1595_v26 = vmul.f32 %v2079_v19, %v1499_v21  ;;  %v1723_v27 = vmul.f32 %v2143_v20, %v1499_v21 }
 0x17e   : > { %v1596_v28 = vmul.f32 %v2080_v23, %v1500_v25  ;;  %v1724_v29 = vmul.f32 %v2144_v24, %v1500_v25 }
 0x180   : > { %v1612_v30 = vpack.c.bf16 %v1596_v28, %v1595_v26  ;;  %v1740_v31 = vpack.c.bf16 %v1724_v29, %v1723_v27 }
 0x182   : > { %1628 = vst [vmem:[%s2813_s14 + $0x78] sm:$0xff] %v1612_v30  ;;  %1756 = vst [vmem:[%s2818_s17 + $0x78] sm:$0xff] %v1740_v31 }
 0x183 PF: > { %s16_s20 = sadd.s32 1, %s2573_s20   ;;  %s2895_s18 = smov %s2569_s19 }
 0x184   : > { %p13_p6 = scmp.ge.s32.totalorder %s16_s20, 4   ;;  %s2896_s19 = smov %s2898_s21 }
 0x186   :  { %15 = sbr.rel (!%p13_p6) target bundleno = 2 (0x2), region = 95 }

// kernel: _lambda_.3
= control target key start
LH: loop header
LB: loop body
LE: loop exit
PB: predicated region body
PF: predicated region fallthrough
CT: control target
= control target key end

     0   :  { %s2301_s9 = smov 0   ;;  %s2303_s10 = smov 0   ;;  %s2668_s0 = inlined_call_operand.vmem [shape: bf16[512,512], index: 0, kind: input, shape index: {}]   ;;  %s2669_s1 = inlined_call_operand.vmem [shape: bf16[512,256], index: 1, kind: input, shape index: {}]   ;;  %s2670_s2 = inlined_call_operand.vmem [shape: f32[512,256], index: 2, kind: output, shape index: {}]  }
   0x1   :  { %s2305_s11 = smov 0  }
   0x2 LB: > { %s24_s12 = sadd.s32 1, %s2280_s10  ;;  %p1843_p0 = scmp.ge.s32.totalorder %s2284_s11, 1  ;;  %s2284_s11 = sphi %s2305_s11, %s12_s11   ;;  %s2280_s10 = sphi %s2303_s10, %s2672_s10   ;;  %s2276_s9 = sphi %s2301_s9, %s2671_s9  }
   0x3   : > { %p26_p1 = scmp.ge.s32.totalorder %s24_s12, 2  ;;  %p145_p2 = scmp.lt.s32.totalorder %s2284_s11, 3 }
   0x5   : > { %s2674_s12 = smov (%p26_p1, %s24_s12), 0  ;;  %p146_p3 = pnand %p1843_p0, %p145_p2 }
   0x6   : > { %v2070_v0 = vld [vmem:[%s2669_s1 + $0x4] ss:$8 sps:$4 sm:$0xff] (!%p146_p3)   ;;  %v2074_v2 = vld [vmem:[%s2669_s1] ss:$8 sps:$4 sm:$0xff] (!%p146_p3)   ;;  %v2076_v4 = vld [vmem:[%s2669_s1 + $0x14] ss:$8 sps:$4 sm:$0xff] (!%p146_p3)  }
   0x7   : > { %149 = sbr.rel (%p146_p3) target bundleno = 410 (0x19a), region = 28  ;;  %v2072_v1 = vld [vmem:[%s2669_s1 + $0x104] ss:$8 sps:$4 sm:$0xff] (!%p146_p3)   ;;  %1105 = vmatprep.subr.bf16.mxu1 (!%p146_p3), %v2070_v0  ;;  %v2075_v3 = vld [vmem:[%s2669_s1 + $0x100] ss:$8 sps:$4 sm:$0xff] (!%p146_p3)   ;;  %s1844_s25 = sshll.u32 (!%p146_p3), %s2276_s9, 5 }
   0x8   : > { %1298 = vmatprep.subr.bf16.mxu0 (!%p146_p3), %v2072_v1  ;;  %1106 = vmatpush1.bf16.msra.mxu1 (!%p146_p3), %v2074_v2  ;;  %v2078_v5 = vld [vmem:[%s2669_s1 + $0x114] ss:$8 sps:$4 sm:$0xff] (!%p146_p3)   ;;  %v2080_v6 = vld [vmem:[%s2669_s1 + $0x10] ss:$8 sps:$4 sm:$0xff] (!%p146_p3)   ;;  %v2082_v8 = vld [vmem:[%s2669_s1 + $0x24] ss:$8 sps:$4 sm:$0xff] (!%p146_p3)  }
   0x9   : > { %1299 = vmatpush1.bf16.msra.mxu0 (!%p146_p3), %v2075_v3  ;;  %1107 = vmatprep.subr.bf16.mxu1 (!%p146_p3), %v2076_v4  ;;  %v2081_v7 = vld [vmem:[%s2669_s1 + $0x110] ss:$8 sps:$4 sm:$0xff] (!%p146_p3)   ;;  %v2084_v9 = vld [vmem:[%s2669_s1 + $0x124] ss:$8 sps:$4 sm:$0xff] (!%p146_p3)   ;;  %v2086_v10 = vld [vmem:[%s2669_s1 + $0x20] ss:$8 sps:$4 sm:$0xff] (!%p146_p3)  }
   0xa   : > { %1300 = vmatprep.subr.bf16.mxu0 (!%p146_p3), %v2078_v5  ;;  %v2087_v11 = vld [vmem:[%s2669_s1 + $0x120] ss:$8 sps:$4 sm:$0xff] (!%p146_p3)   ;;  %v2088_v12 = vld [vmem:[%s2669_s1 + $0x34] ss:$8 sps:$4 sm:$0xff] (!%p146_p3)   ;;  %v2092_v14 = vld [vmem:[%s2669_s1 + $0x30] ss:$8 sps:$4 sm:$0xff] (!%p146_p3)  }
   0xb   : > { %v2090_v13 = vld [vmem:[%s2669_s1 + $0x134] ss:$8 sps:$4 sm:$0xff] (!%p146_p3)   ;;  %v2093_v15 = vld [vmem:[%s2669_s1 + $0x130] ss:$8 sps:$4 sm:$0xff] (!%p146_p3)   ;;  %v2094_v16 = vld [vmem:[%s2669_s1 + $0x44] ss:$8 sps:$4 sm:$0xff] (!%p146_p3)  }
   0xc   : > { %1108 = vmatpush1.bf16.msra.mxu1 (!%p146_p3), %v2080_v6  ;;  %v2096_v17 = vld [vmem:[%s2669_s1 + $0x144] ss:$8 sps:$4 sm:$0xff] (!%p146_p3)   ;;  %v2098_v18 = vld [vmem:[%s2669_s1 + $0x40] ss:$8 sps:$4 sm:$0xff] (!%p146_p3)   ;;  %v2100_v20 = vld [vmem:[%s2669_s1 + $0x54] ss:$8 sps:$4 sm:$0xff] (!%p146_p3)  }
   0xd   : > { %1301 = vmatpush1.bf16.msra.mxu0 (!%p146_p3), %v2081_v7  ;;  %1109 = vmatprep.subr.bf16.mxu1 (!%p146_p3), %v2082_v8  ;;  %v2099_v19 = vld [vmem:[%s2669_s1 + $0x140] ss:$8 sps:$4 sm:$0xff] (!%p146_p3)   ;;  %v2102_v21 = vld [vmem:[%s2669_s1 + $0x154] ss:$8 sps:$4 sm:$0xff] (!%p146_p3)   ;;  %v2104_v22 = vld [vmem:[%s2669_s1 + $0x50] ss:$8 sps:$4 sm:$0xff] (!%p146_p3)  }
   0xe   : > { %1302 = vmatprep.subr.bf16.mxu0 %v2084_v9  ;;  %v2105_v23 = vld [vmem:[%s2669_s1 + $0x150] ss:$8 sps:$4 sm:$0xff]   ;;  %v2106_v24 = vld [vmem:[%s2669_s1 + $0x64] ss:$8 sps:$4 sm:$0xff]   ;;  %v2110_v26 = vld [vmem:[%s2669_s1 + $0x60] ss:$8 sps:$4 sm:$0xff]  }
   0xf   : > { %v2108_v25 = vld [vmem:[%s2669_s1 + $0x164] ss:$8 sps:$4 sm:$0xff]   ;;  %v2111_v27 = vld [vmem:[%s2669_s1 + $0x160] ss:$8 sps:$4 sm:$0xff]   ;;  %v2112_v28 = vld [vmem:[%s2669_s1 + $0x74] ss:$8 sps:$4 sm:$0xff]  }
  0x10   : > { %1110 = vmatpush1.bf16.msra.mxu1 %v2086_v10  ;;  %v2114_v29 = vld [vmem:[%s2669_s1 + $0x174] ss:$8 sps:$4 sm:$0xff]   ;;  %v2116_v30 = vld [vmem:[%s2669_s1 + $0x70] ss:$8 sps:$4 sm:$0xff]   ;;  %v2118_v32 = vld [vmem:[%s2669_s1 + $0x84] ss:$8 sps:$4 sm:$0xff]  }
  0x11   : > { %1303 = vmatpush1.bf16.msra.mxu0 %v2087_v11  ;;  %1111 = vmatprep.subr.bf16.mxu1 %v2088_v12  ;;  %v2117_v31 = vld [vmem:[%s2669_s1 + $0x170] ss:$8 sps:$4 sm:$0xff]   ;;  %v2120_v33 = vld [vmem:[%s2669_s1 + $0x184] ss:$8 sps:$4 sm:$0xff]   ;;  %p181_p4 = scmp.lt.s32.totalorder %s1844_s25, 63 }
  0x12   : > { %1304 = vmatprep.subr.bf16.mxu0 %v2090_v13  ;;  %v2122_v34 = vld [vmem:[%s2669_s1 + $0x80] ss:$8 sps:$4 sm:$0xff]   ;;  %v2124_v36 = vld [vmem:[%s2669_s1 + $0x94] ss:$8 sps:$4 sm:$0xff]   ;;  %v2128_v38 = vld [vmem:[%s2669_s1 + $0x90] ss:$8 sps:$4 sm:$0xff]  }
  0x13   : > { %v2123_v35 = vld [vmem:[%s2669_s1 + $0x180] ss:$8 sps:$4 sm:$0xff]   ;;  %v2126_v37 = vld [vmem:[%s2669_s1 + $0x194] ss:$8 sps:$4 sm:$0xff]   ;;  %s2676_s25 = smov (!%p181_p4, %s1844_s25), 63 }
  0x14   : > { %1112 = vmatpush1.bf16.msra.mxu1 %v2092_v14  ;;  %v2129_v39 = vld [vmem:[%s2669_s1 + $0x190] ss:$8 sps:$4 sm:$0xff]   ;;  %v2130_v40 = vld [vmem:[%s2669_s1 + $0xa4] ss:$8 sps:$4 sm:$0xff]   ;;  %s1980_s26 = sshll.u32 %s2676_s25, 4 }
  0x15   : > { %1305 = vmatpush1.bf16.msra.mxu0 %v2093_v15  ;;  %1113 = vmatprep.subr.bf16.mxu1 %v2094_v16  ;;  %v2132_v41 = vld [vmem:[%s2669_s1 + $0x1a4] ss:$8 sps:$4 sm:$0xff]   ;;  %v2134_v42 = vld [vmem:[%s2669_s1 + $0xa0] ss:$8 sps:$4 sm:$0xff]   ;;  %v2136_v44 = vld [vmem:[%s2669_s1 + $0xb4] ss:$8 sps:$4 sm:$0xff]   ;;  %s2465_s6 = scalar_lea.vmem %s2668_s0, %s1980_s26  ;;  %s2593_s3 = scalar_lea.vmem %s2670_s2, %s1980_s26 }
  0x16   : > { %1306 = vmatprep.subr.bf16.mxu0 %v2096_v17  ;;  %v2135_v43 = vld [vmem:[%s2669_s1 + $0x1a0] ss:$8 sps:$4 sm:$0xff]   ;;  %v2138_v45 = vld [vmem:[%s2669_s1 + $0x1b4] ss:$8 sps:$4 sm:$0xff]   ;;  %v2140_v46 = vld [vmem:[%s2669_s1 + $0xb0] ss:$8 sps:$4 sm:$0xff]  }
  0x17   : > { %v2141_v47 = vld [vmem:[%s2669_s1 + $0x1b0] ss:$8 sps:$4 sm:$0xff]   ;;  %v2142_v48 = vld [vmem:[%s2669_s1 + $0xc4] ss:$8 sps:$4 sm:$0xff]   ;;  %v2146_v52 = vld [vmem:[%s2669_s1 + $0xc0] ss:$8 sps:$4 sm:$0xff]  }
  0x18   : > { %1114 = vmatpush1.bf16.msra.mxu1 %v2098_v18  ;;  %v2168_v49 = vld [vmem:[%s2465_s6 + $0x4] ss:$16 sps:$4 sm:$0xff]   ;;  %v2171_v51 = vld [vmem:[%s2465_s6 + $0xc] ss:$16 sps:$4 sm:$0xff]   ;;  %v2147_v53 = vld [vmem:[%s2669_s1 + $0x1c0] ss:$8 sps:$4 sm:$0xff]  }
  0x19   : > { %1307 = vmatpush1.bf16.msra.mxu0 %v2099_v19  ;;  %1115 = vmatprep.subr.bf16.mxu1 %v2100_v20  ;;  %v2144_v50 = vld [vmem:[%s2669_s1 + $0x1c4] ss:$8 sps:$4 sm:$0xff]   ;;  %v2148_v54 = vld [vmem:[%s2669_s1 + $0xd4] ss:$8 sps:$4 sm:$0xff]   ;;  %v2152_v56 = vld [vmem:[%s2669_s1 + $0xd0] ss:$8 sps:$4 sm:$0xff]  }
  0x1a   : > { %1308 = vmatprep.subr.bf16.mxu0 %v2102_v21  ;;  %1137 = vmatprep.mubr.bf16.mxu1 %v2168_v49  ;;  %v2150_v55 = vld [vmem:[%s2669_s1 + $0x1d4] ss:$8 sps:$4 sm:$0xff]   ;;  %v2153_v57 = vld [vmem:[%s2669_s1 + $0x1d0] ss:$8 sps:$4 sm:$0xff]   ;;  %v2154_v58 = vld [vmem:[%s2669_s1 + $0xe4] ss:$8 sps:$4 sm:$0xff]  }
  0x1b   : > { %1330 = vmatprep.mubr.bf16.mxu0 %v2171_v51  ;;  %v2156_v59 = vld [vmem:[%s2669_s1 + $0x1e4] ss:$8 sps:$4 sm:$0xff]   ;;  %v2158_v60 = vld [vmem:[%s2669_s1 + $0xe0] ss:$8 sps:$4 sm:$0xff]   ;;  %v2160_v62 = vld [vmem:[%s2669_s1 + $0xf4] ss:$8 sps:$4 sm:$0xff]  }
  0x1c   : > { %1116 = vmatpush1.bf16.msra.mxu1 %v2104_v22  ;;  %v2159_v61 = vld [vmem:[%s2669_s1 + $0x1e0] ss:$8 sps:$4 sm:$0xff]   ;;  %v2162_v63 = vld [vmem:[%s2669_s1 + $0x1f4] ss:$8 sps:$4 sm:$0xff]   ;;  %v2164_v0 = vld [vmem:[%s2669_s1 + $0xf0] ss:$8 sps:$4 sm:$0xff]  }
  0x1d   : > { %1309 = vmatpush1.bf16.msra.mxu0 %v2105_v23  ;;  %1117 = vmatprep.subr.bf16.mxu1 %v2106_v24  ;;  %v2165_v1 = vld [vmem:[%s2669_s1 + $0x1f0] ss:$8 sps:$4 sm:$0xff]   ;;  %v2172_v4 = vld [vmem:[%s2465_s6 + $0x24] ss:$16 sps:$4 sm:$0xff]   ;;  %v2174_v5 = vld [vmem:[%s2465_s6 + $0x2c] ss:$16 sps:$4 sm:$0xff]  }
  0x1e   : > { %1310 = vmatprep.subr.bf16.mxu0 %v2108_v25  ;;  %v2166_v2 = vld [vmem:[%s2465_s6] ss:$16 sps:$4 sm:$0xff]   ;;  %v2169_v3 = vld [vmem:[%s2465_s6 + $0x8] ss:$16 sps:$4 sm:$0xff]   ;;  %v2178_v8 = vld [vmem:[%s2465_s6 + $0x44] ss:$16 sps:$4 sm:$0xff]  }
  0x1f   : > { %v2176_v6 = vld [vmem:[%s2465_s6 + $0x20] ss:$16 sps:$4 sm:$0xff]   ;;  %v2177_v7 = vld [vmem:[%s2465_s6 + $0x28] ss:$16 sps:$4 sm:$0xff]   ;;  %v2180_v9 = vld [vmem:[%s2465_s6 + $0x4c] ss:$16 sps:$4 sm:$0xff]  }
  0x20   : > { %1118 = vmatpush1.bf16.msra.mxu1 %v2110_v26  ;;  %v2182_v10 = vld [vmem:[%s2465_s6 + $0x40] ss:$16 sps:$4 sm:$0xff]   ;;  %v2183_v11 = vld [vmem:[%s2465_s6 + $0x48] ss:$16 sps:$4 sm:$0xff]   ;;  %v2184_v12 = vld [vmem:[%s2465_s6 + $0x64] ss:$16 sps:$4 sm:$0xff]  }
  0x21   : > { %1311 = vmatpush1.bf16.msra.mxu0 %v2111_v27  ;;  %1119 = vmatprep.subr.bf16.mxu1 %v2112_v28  ;;  %v2186_v13 = vld [vmem:[%s2465_s6 + $0x6c] ss:$16 sps:$4 sm:$0xff]   ;;  %v2188_v14 = vld [vmem:[%s2465_s6 + $0x60] ss:$16 sps:$4 sm:$0xff]   ;;  %v2189_v15 = vld [vmem:[%s2465_s6 + $0x68] ss:$16 sps:$4 sm:$0xff]  }
  0x22   : > { %1312 = vmatprep.subr.bf16.mxu0 %v2114_v29  ;;  %v2190_v16 = vld [vmem:[%s2465_s6 + $0x84] ss:$16 sps:$4 sm:$0xff]   ;;  %v2192_v17 = vld [vmem:[%s2465_s6 + $0x8c] ss:$16 sps:$4 sm:$0xff]   ;;  %v2194_v18 = vld [vmem:[%s2465_s6 + $0x80] ss:$16 sps:$4 sm:$0xff]  }
  0x23   : > { %v2195_v19 = vld [vmem:[%s2465_s6 + $0x88] ss:$16 sps:$4 sm:$0xff]   ;;  %v2196_v20 = vld [vmem:[%s2465_s6 + $0xa4] ss:$16 sps:$4 sm:$0xff]   ;;  %v2198_v21 = vld [vmem:[%s2465_s6 + $0xac] ss:$16 sps:$4 sm:$0xff]  }
  0x24   : > { %1120 = vmatpush1.bf16.msra.mxu1 %v2116_v30  ;;  %v2200_v22 = vld [vmem:[%s2465_s6 + $0xa0] ss:$16 sps:$4 sm:$0xff]   ;;  %v2201_v23 = vld [vmem:[%s2465_s6 + $0xa8] ss:$16 sps:$4 sm:$0xff]   ;;  %v2202_v24 = vld [vmem:[%s2465_s6 + $0xc4] ss:$16 sps:$4 sm:$0xff]  }
  0x25   : > { %1313 = vmatpush1.bf16.msra.mxu0 %v2117_v31  ;;  %1121 = vmatprep.subr.bf16.mxu1 %v2118_v32  ;;  %v2204_v25 = vld [vmem:[%s2465_s6 + $0xcc] ss:$16 sps:$4 sm:$0xff]   ;;  %v2206_v26 = vld [vmem:[%s2465_s6 + $0xc0] ss:$16 sps:$4 sm:$0xff]   ;;  %v2207_v27 = vld [vmem:[%s2465_s6 + $0xc8] ss:$16 sps:$4 sm:$0xff]  }
  0x26   : > { %1314 = vmatprep.subr.bf16.mxu0 %v2120_v33  ;;  %v2208_v28 = vld [vmem:[%s2465_s6 + $0xe4] ss:$16 sps:$4 sm:$0xff]   ;;  %v2210_v29 = vld [vmem:[%s2465_s6 + $0xec] ss:$16 sps:$4 sm:$0xff]   ;;  %v2212_v30 = vld [vmem:[%s2465_s6 + $0xe0] ss:$16 sps:$4 sm:$0xff]  }
  0x27   : > { %v2213_v31 = vld [vmem:[%s2465_s6 + $0xe8] ss:$16 sps:$4 sm:$0xff]   ;;  %v2214_v32 = vld [vmem:[%s2465_s6 + $0x104] ss:$16 sps:$4 sm:$0xff]   ;;  %v2216_v33 = vld [vmem:[%s2465_s6 + $0x10c] ss:$16 sps:$4 sm:$0xff]  }
  0x28   : > { %1122 = vmatpush1.bf16.msra.mxu1 %v2122_v34  ;;  %v2218_v34 = vld [vmem:[%s2465_s6 + $0x100] ss:$16 sps:$4 sm:$0xff]   ;;  %v2240_v49 = vld [vmem:[%s2465_s6 + $0x18c] ss:$16 sps:$4 sm:$0xff]   ;;  %v2243_v51 = vld [vmem:[%s2465_s6 + $0x188] ss:$16 sps:$4 sm:$0xff]  }
  0x29   : > { %1315 = vmatpush1.bf16.msra.mxu0 %v2123_v35  ;;  %1123 = vmatprep.subr.bf16.mxu1 %v2124_v36  ;;  %v2219_v35 = vld [vmem:[%s2465_s6 + $0x108] ss:$16 sps:$4 sm:$0xff]   ;;  %v2220_v36 = vld [vmem:[%s2465_s6 + $0x124] ss:$16 sps:$4 sm:$0xff]  }
  0x2a   : > { %1316 = vmatprep.subr.bf16.mxu0 %v2126_v37  ;;  %v2222_v37 = vld [vmem:[%s2465_s6 + $0x12c] ss:$16 sps:$4 sm:$0xff]  }
  0x2c   : > { %1124 = vmatpush1.bf16.msra.mxu1 %v2128_v38  ;;  %v2224_v38 = vld [vmem:[%s2465_s6 + $0x120] ss:$16 sps:$4 sm:$0xff]  }
  0x2d   : > { %1317 = vmatpush1.bf16.msra.mxu0 %v2129_v39  ;;  %1125 = vmatprep.subr.bf16.mxu1 %v2130_v40  ;;  %v2225_v39 = vld [vmem:[%s2465_s6 + $0x128] ss:$16 sps:$4 sm:$0xff]   ;;  %v2226_v40 = vld [vmem:[%s2465_s6 + $0x144] ss:$16 sps:$4 sm:$0xff]  }
  0x2e   : > { %1318 = vmatprep.subr.bf16.mxu0 %v2132_v41  ;;  %v2228_v41 = vld [vmem:[%s2465_s6 + $0x14c] ss:$16 sps:$4 sm:$0xff]  }
  0x30   : > { %1126 = vmatpush1.bf16.msra.mxu1 %v2134_v42  ;;  %v2230_v42 = vld [vmem:[%s2465_s6 + $0x140] ss:$16 sps:$4 sm:$0xff]  }
  0x31   : > { %1319 = vmatpush1.bf16.msra.mxu0 %v2135_v43  ;;  %1127 = vmatprep.subr.bf16.mxu1 %v2136_v44  ;;  %v2231_v43 = vld [vmem:[%s2465_s6 + $0x148] ss:$16 sps:$4 sm:$0xff]   ;;  %v2232_v44 = vld [vmem:[%s2465_s6 + $0x164] ss:$16 sps:$4 sm:$0xff]  }
  0x32   : > { %1320 = vmatprep.subr.bf16.mxu0 %v2138_v45  ;;  %v2234_v45 = vld [vmem:[%s2465_s6 + $0x16c] ss:$16 sps:$4 sm:$0xff]  }
  0x34   : > { %1128 = vmatpush1.bf16.msra.mxu1 %v2140_v46  ;;  %v2236_v46 = vld [vmem:[%s2465_s6 + $0x160] ss:$16 sps:$4 sm:$0xff]  }
  0x35   : > { %1321 = vmatpush1.bf16.msra.mxu0 %v2141_v47  ;;  %1129 = vmatprep.subr.bf16.mxu1 %v2142_v48  ;;  %v2237_v47 = vld [vmem:[%s2465_s6 + $0x168] ss:$16 sps:$4 sm:$0xff]   ;;  %v2238_v48 = vld [vmem:[%s2465_s6 + $0x184] ss:$16 sps:$4 sm:$0xff]  }
  0x36   : > { %1322 = vmatprep.subr.bf16.mxu0 %v2144_v50  ;;  %v2242_v50 = vld [vmem:[%s2465_s6 + $0x180] ss:$16 sps:$4 sm:$0xff]  }
  0x38   : > { %1130 = vmatpush1.bf16.msra.mxu1 %v2146_v52  ;;  %v2244_v52 = vld [vmem:[%s2465_s6 + $0x1a4] ss:$16 sps:$4 sm:$0xff]  }
  0x39   : > { %1323 = vmatpush1.bf16.msra.mxu0 %v2147_v53  ;;  %1131 = vmatprep.subr.bf16.mxu1 %v2148_v54  ;;  %v2246_v53 = vld [vmem:[%s2465_s6 + $0x1ac] ss:$16 sps:$4 sm:$0xff]   ;;  %v2248_v54 = vld [vmem:[%s2465_s6 + $0x1a0] ss:$16 sps:$4 sm:$0xff]  }
  0x3a   : > { %1324 = vmatprep.subr.bf16.mxu0 %v2150_v55  ;;  %v2249_v55 = vld [vmem:[%s2465_s6 + $0x1a8] ss:$16 sps:$4 sm:$0xff]  }
  0x3c   : > { %1132 = vmatpush1.bf16.msra.mxu1 %v2152_v56  ;;  %v2250_v56 = vld [vmem:[%s2465_s6 + $0x1c4] ss:$16 sps:$4 sm:$0xff]  }
  0x3d   : > { %1325 = vmatpush1.bf16.msra.mxu0 %v2153_v57  ;;  %1133 = vmatprep.subr.bf16.mxu1 %v2154_v58  ;;  %v2252_v57 = vld [vmem:[%s2465_s6 + $0x1cc] ss:$16 sps:$4 sm:$0xff]   ;;  %v2254_v58 = vld [vmem:[%s2465_s6 + $0x1c0] ss:$16 sps:$4 sm:$0xff]  }
  0x3e   : > { %1326 = vmatprep.subr.bf16.mxu0 %v2156_v59  ;;  %v2255_v59 = vld [vmem:[%s2465_s6 + $0x1c8] ss:$16 sps:$4 sm:$0xff]  }
  0x40   : > { %1134 = vmatpush1.bf16.msra.mxu1 %v2158_v60  ;;  %v2256_v60 = vld [vmem:[%s2465_s6 + $0x1e4] ss:$16 sps:$4 sm:$0xff]  }
  0x41   : > { %1327 = vmatpush1.bf16.msra.mxu0 %v2159_v61  ;;  %1135 = vmatprep.subr.bf16.mxu1 %v2160_v62  ;;  %v2258_v61 = vld [vmem:[%s2465_s6 + $0x1ec] ss:$16 sps:$4 sm:$0xff]   ;;  %v2260_v62 = vld [vmem:[%s2465_s6 + $0x1e0] ss:$16 sps:$4 sm:$0xff]  }
  0x42   : > { %1328 = vmatprep.subr.bf16.mxu0 %v2162_v63  ;;  %v2261_v63 = vld [vmem:[%s2465_s6 + $0x1e8] ss:$16 sps:$4 sm:$0xff]  }
  0x44   : > { %1136 = vmatpush1.bf16.msra.mxu1 %v2164_v0 }
  0x45   : > { %1329 = vmatpush1.bf16.msra.mxu0 %v2165_v1 }
  0x47   : > { %1138 = vmatmul.mubr.bf16.vlgmr.msra.gmra.mrb[0].mxu1 %v2166_v2 }
  0x48   : > { %1331 = vmatmul.mubr.bf16.vlgmr.msra.gmra.mrb[0].mxu0 %v2169_v3  ;;  %1147 = vmatprep.mubr.bf16.mxu1 %v2172_v4 }
  0x49   : > { %1340 = vmatprep.mubr.bf16.mxu0 %v2174_v5 }
  0x4f   : > { %1148 = vmatmul.mubr.bf16.gmra.mrb[4].mxu1 %v2176_v6 }
  0x50   : > { %1341 = vmatmul.mubr.bf16.gmra.mrb[4].mxu0 %v2177_v7  ;;  %1157 = vmatprep.mubr.bf16.mxu1 %v2178_v8 }
  0x51   : > { %1350 = vmatprep.mubr.bf16.mxu0 %v2180_v9 }
  0x57   : > { %1158 = vmatmul.mubr.bf16.gmra.mrb[8].mxu1 %v2182_v10 }
  0x58   : > { %1351 = vmatmul.mubr.bf16.gmra.mrb[8].mxu0 %v2183_v11  ;;  %1167 = vmatprep.mubr.bf16.mxu1 %v2184_v12 }
  0x59   : > { %1360 = vmatprep.mubr.bf16.mxu0 %v2186_v13 }
  0x5f   : > { %1168 = vmatmul.mubr.bf16.gmra.mrb[12].mxu1 %v2188_v14 }
  0x60   : > { %1361 = vmatmul.mubr.bf16.gmra.mrb[12].mxu0 %v2189_v15  ;;  %1177 = vmatprep.mubr.bf16.mxu1 %v2190_v16 }
  0x61   : > { %1370 = vmatprep.mubr.bf16.mxu0 %v2192_v17 }
  0x67   : > { %1178 = vmatmul.mubr.bf16.gmra.mrb[16].mxu1 %v2194_v18 }
  0x68   : > { %1371 = vmatmul.mubr.bf16.gmra.mrb[16].mxu0 %v2195_v19  ;;  %1187 = vmatprep.mubr.bf16.mxu1 %v2196_v20 }
  0x69   : > { %1380 = vmatprep.mubr.bf16.mxu0 %v2198_v21 }
  0x6f   : > { %1188 = vmatmul.mubr.bf16.gmra.mrb[20].mxu1 %v2200_v22 }
  0x70   : > { %1381 = vmatmul.mubr.bf16.gmra.mrb[20].mxu0 %v2201_v23  ;;  %1197 = vmatprep.mubr.bf16.mxu1 %v2202_v24 }
  0x71   : > { %1390 = vmatprep.mubr.bf16.mxu0 %v2204_v25 }
  0x77   : > { %1198 = vmatmul.mubr.bf16.gmra.mrb[24].mxu1 %v2206_v26 }
  0x78   : > { %1391 = vmatmul.mubr.bf16.gmra.mrb[24].mxu0 %v2207_v27  ;;  %1207 = vmatprep.mubr.bf16.mxu1 %v2208_v28 }
  0x79   : > { %1400 = vmatprep.mubr.bf16.mxu0 %v2210_v29 }
  0x7f   : > { %1208 = vmatmul.mubr.bf16.gmra.mrb[28].mxu1 %v2212_v30 }
  0x80   : > { %1401 = vmatmul.mubr.bf16.gmra.mrb[28].mxu0 %v2213_v31  ;;  %1217 = vmatprep.mubr.bf16.mxu1 %v2214_v32 }
  0x81   : > { %1410 = vmatprep.mubr.bf16.mxu0 %v2216_v33 }
  0x87   : > { %1218 = vmatmul.mubr.bf16.gmra.mrb[32].mxu1 %v2218_v34 }
  0x88   : > { %1411 = vmatmul.mubr.bf16.gmra.mrb[32].mxu0 %v2219_v35  ;;  %1227 = vmatprep.mubr.bf16.mxu1 %v2220_v36 }
  0x89   : > { %1420 = vmatprep.mubr.bf16.mxu0 %v2222_v37 }
  0x8f   : > { %1228 = vmatmul.mubr.bf16.gmra.mrb[36].mxu1 %v2224_v38 }
  0x90   : > { %1421 = vmatmul.mubr.bf16.gmra.mrb[36].mxu0 %v2225_v39  ;;  %1237 = vmatprep.mubr.bf16.mxu1 %v2226_v40 }
  0x91   : > { %1430 = vmatprep.mubr.bf16.mxu0 %v2228_v41 }
  0x97   : > { %1238 = vmatmul.mubr.bf16.gmra.mrb[40].mxu1 %v2230_v42 }
  0x98   : > { %1431 = vmatmul.mubr.bf16.gmra.mrb[40].mxu0 %v2231_v43  ;;  %1247 = vmatprep.mubr.bf16.mxu1 %v2232_v44 }
  0x99   : > { %1440 = vmatprep.mubr.bf16.mxu0 %v2234_v45 }
  0x9f   : > { %1248 = vmatmul.mubr.bf16.gmra.mrb[44].mxu1 %v2236_v46 }
  0xa0   : > { %1441 = vmatmul.mubr.bf16.gmra.mrb[44].mxu0 %v2237_v47  ;;  %1257 = vmatprep.mubr.bf16.mxu1 %v2238_v48 }
  0xa1   : > { %1450 = vmatprep.mubr.bf16.mxu0 %v2240_v49 }
  0xa7   : > { %1258 = vmatmul.mubr.bf16.gmra.mrb[48].mxu1 %v2242_v50 }
  0xa8   : > { %1451 = vmatmul.mubr.bf16.gmra.mrb[48].mxu0 %v2243_v51  ;;  %1267 = vmatprep.mubr.bf16.mxu1 %v2244_v52 }
  0xa9   : > { %1460 = vmatprep.mubr.bf16.mxu0 %v2246_v53 }
  0xaf   : > { %1268 = vmatmul.mubr.bf16.gmra.mrb[52].mxu1 %v2248_v54 }
  0xb0   : > { %1461 = vmatmul.mubr.bf16.gmra.mrb[52].mxu0 %v2249_v55  ;;  %1277 = vmatprep.mubr.bf16.mxu1 %v2250_v56 }
  0xb1   : > { %1470 = vmatprep.mubr.bf16.mxu0 %v2252_v57 }
  0xb7   : > { %1278 = vmatmul.mubr.bf16.gmra.mrb[56].mxu1 %v2254_v58 }
  0xb8   : > { %1471 = vmatmul.mubr.bf16.gmra.mrb[56].mxu0 %v2255_v59  ;;  %1287 = vmatprep.mubr.bf16.mxu1 %v2256_v60 }
  0xb9   : > { %1480 = vmatprep.mubr.bf16.mxu0 %v2258_v61 }
  0xbf   : > { %1288 = vmatmul.mubr.bf16.gmra.mrb[60].mxu1 %v2260_v62 }
  0xc0   : > { %1481 = vmatmul.mubr.bf16.gmra.mrb[60].mxu0 %v2261_v63 }
 0x11a   : > { %v1139_v0 = vpop.f32.mrb[0].mxu1 }
 0x11b   : > { %v1332_v1 = vpop.f32.mrb[0].mxu0  ;;  %v1141_v3 = vpop.f32.mrb[1].mxu1 }
 0x11c   : > { %v1333_v2 = vadd.f32 %v1332_v1, %v1139_v0  ;;  %v1334_v4 = vpop.f32.mrb[1].mxu0  ;;  %v1143_v6 = vpop.f32.mrb[2].mxu1 }
 0x11d   : > { %v1335_v5 = vadd.f32 %v1334_v4, %v1141_v3  ;;  %v1336_v7 = vpop.f32.mrb[2].mxu0  ;;  %v1145_v9 = vpop.f32.mrb[3].mxu1 }
 0x11e   : > { %1686 = vst [vmem:[%s2593_s3] sm:$0xff] %v1333_v2  ;;  %v1337_v8 = vadd.f32 %v1336_v7, %v1143_v6  ;;  %v1338_v10 = vpop.f32.mrb[3].mxu0 }
 0x11f   : > { %1687 = vst [vmem:[%s2593_s3 + $0x8] sm:$0xff] %v1335_v5  ;;  %v1339_v11 = vadd.f32 %v1338_v10, %v1145_v9 }
 0x120   : > { %1688 = vst [vmem:[%s2593_s3 + $0x10] sm:$0xff] %v1337_v8 }
 0x121   : > { %1689 = vst [vmem:[%s2593_s3 + $0x18] sm:$0xff] %v1339_v11 }
 0x122   : > { %v1149_v12 = vpop.f32.mrb[4].mxu1 }
 0x123   : > { %v1342_v13 = vpop.f32.mrb[4].mxu0  ;;  %v1151_v15 = vpop.f32.mrb[5].mxu1 }
 0x124   : > { %v1343_v14 = vadd.f32 %v1342_v13, %v1149_v12  ;;  %v1344_v16 = vpop.f32.mrb[5].mxu0  ;;  %v1153_v18 = vpop.f32.mrb[6].mxu1 }
 0x125   : > { %v1345_v17 = vadd.f32 %v1344_v16, %v1151_v15  ;;  %v1346_v19 = vpop.f32.mrb[6].mxu0  ;;  %v1155_v21 = vpop.f32.mrb[7].mxu1 }
 0x126   : > { %1690 = vst [vmem:[%s2593_s3 + $0x20] sm:$0xff] %v1343_v14  ;;  %v1347_v20 = vadd.f32 %v1346_v19, %v1153_v18  ;;  %v1348_v22 = vpop.f32.mrb[7].mxu0 }
 0x127   : > { %1691 = vst [vmem:[%s2593_s3 + $0x28] sm:$0xff] %v1345_v17  ;;  %v1349_v23 = vadd.f32 %v1348_v22, %v1155_v21 }
 0x128   : > { %1692 = vst [vmem:[%s2593_s3 + $0x30] sm:$0xff] %v1347_v20 }
 0x129   : > { %1693 = vst [vmem:[%s2593_s3 + $0x38] sm:$0xff] %v1349_v23 }
 0x12a   : > { %v1159_v24 = vpop.f32.mrb[8].mxu1 }
 0x12b   : > { %v1352_v25 = vpop.f32.mrb[8].mxu0  ;;  %v1161_v27 = vpop.f32.mrb[9].mxu1 }
 0x12c   : > { %v1353_v26 = vadd.f32 %v1352_v25, %v1159_v24  ;;  %v1354_v28 = vpop.f32.mrb[9].mxu0  ;;  %v1163_v30 = vpop.f32.mrb[10].mxu1 }
 0x12d   : > { %v1355_v29 = vadd.f32 %v1354_v28, %v1161_v27  ;;  %v1356_v31 = vpop.f32.mrb[10].mxu0  ;;  %v1165_v33 = vpop.f32.mrb[11].mxu1 }
 0x12e   : > { %1694 = vst [vmem:[%s2593_s3 + $0x40] sm:$0xff] %v1353_v26  ;;  %v1357_v32 = vadd.f32 %v1356_v31, %v1163_v30  ;;  %v1358_v34 = vpop.f32.mrb[11].mxu0 }
 0x12f   : > { %1695 = vst [vmem:[%s2593_s3 + $0x48] sm:$0xff] %v1355_v29  ;;  %v1359_v35 = vadd.f32 %v1358_v34, %v1165_v33 }
 0x130   : > { %1696 = vst [vmem:[%s2593_s3 + $0x50] sm:$0xff] %v1357_v32 }
 0x131   : > { %1697 = vst [vmem:[%s2593_s3 + $0x58] sm:$0xff] %v1359_v35 }
 0x132   : > { %v1169_v36 = vpop.f32.mrb[12].mxu1 }
 0x133   : > { %v1362_v37 = vpop.f32.mrb[12].mxu0  ;;  %v1171_v39 = vpop.f32.mrb[13].mxu1 }
 0x134   : > { %v1363_v38 = vadd.f32 %v1362_v37, %v1169_v36  ;;  %v1364_v40 = vpop.f32.mrb[13].mxu0  ;;  %v1173_v42 = vpop.f32.mrb[14].mxu1 }
 0x135   : > { %v1365_v41 = vadd.f32 %v1364_v40, %v1171_v39  ;;  %v1366_v43 = vpop.f32.mrb[14].mxu0  ;;  %v1175_v45 = vpop.f32.mrb[15].mxu1 }
 0x136   : > { %1698 = vst [vmem:[%s2593_s3 + $0x60] sm:$0xff] %v1363_v38  ;;  %v1367_v44 = vadd.f32 %v1366_v43, %v1173_v42  ;;  %v1368_v46 = vpop.f32.mrb[15].mxu0 }
 0x137   : > { %1699 = vst [vmem:[%s2593_s3 + $0x68] sm:$0xff] %v1365_v41  ;;  %v1369_v47 = vadd.f32 %v1368_v46, %v1175_v45 }
 0x138   : > { %1700 = vst [vmem:[%s2593_s3 + $0x70] sm:$0xff] %v1367_v44 }
 0x139   : > { %1701 = vst [vmem:[%s2593_s3 + $0x78] sm:$0xff] %v1369_v47 }
 0x13a   : > { %v1179_v48 = vpop.f32.mrb[16].mxu1 }
 0x13b   : > { %v1372_v49 = vpop.f32.mrb[16].mxu0  ;;  %v1181_v51 = vpop.f32.mrb[17].mxu1 }
 0x13c   : > { %v1373_v50 = vadd.f32 %v1372_v49, %v1179_v48  ;;  %v1374_v52 = vpop.f32.mrb[17].mxu0  ;;  %v1183_v54 = vpop.f32.mrb[18].mxu1 }
 0x13d   : > { %v1375_v53 = vadd.f32 %v1374_v52, %v1181_v51  ;;  %v1376_v55 = vpop.f32.mrb[18].mxu0  ;;  %v1185_v57 = vpop.f32.mrb[19].mxu1 }
 0x13e   : > { %1702 = vst [vmem:[%s2593_s3 + $0x80] sm:$0xff] %v1373_v50  ;;  %v1377_v56 = vadd.f32 %v1376_v55, %v1183_v54  ;;  %v1378_v58 = vpop.f32.mrb[19].mxu0 }
 0x13f   : > { %1703 = vst [vmem:[%s2593_s3 + $0x88] sm:$0xff] %v1375_v53  ;;  %v1379_v59 = vadd.f32 %v1378_v58, %v1185_v57 }
 0x140   : > { %1704 = vst [vmem:[%s2593_s3 + $0x90] sm:$0xff] %v1377_v56 }
 0x141   : > { %1705 = vst [vmem:[%s2593_s3 + $0x98] sm:$0xff] %v1379_v59 }
 0x142   : > { %v1189_v60 = vpop.f32.mrb[20].mxu1 }
 0x143   : > { %v1382_v61 = vpop.f32.mrb[20].mxu0  ;;  %v1191_v63 = vpop.f32.mrb[21].mxu1 }
 0x144   : > { %v1383_v62 = vadd.f32 %v1382_v61, %v1189_v60  ;;  %v1384_v0 = vpop.f32.mrb[21].mxu0  ;;  %v1193_v2 = vpop.f32.mrb[22].mxu1 }
 0x145   : > { %v1385_v1 = vadd.f32 %v1384_v0, %v1191_v63  ;;  %v1386_v3 = vpop.f32.mrb[22].mxu0  ;;  %v1195_v5 = vpop.f32.mrb[23].mxu1 }
 0x146   : > { %1706 = vst [vmem:[%s2593_s3 + $0xa0] sm:$0xff] %v1383_v62  ;;  %v1387_v4 = vadd.f32 %v1386_v3, %v1193_v2  ;;  %v1388_v6 = vpop.f32.mrb[23].mxu0 }
 0x147   : > { %1707 = vst [vmem:[%s2593_s3 + $0xa8] sm:$0xff] %v1385_v1  ;;  %v1389_v7 = vadd.f32 %v1388_v6, %v1195_v5 }
 0x148   : > { %1708 = vst [vmem:[%s2593_s3 + $0xb0] sm:$0xff] %v1387_v4 }
 0x149   : > { %1709 = vst [vmem:[%s2593_s3 + $0xb8] sm:$0xff] %v1389_v7 }
 0x14a   : > { %v1199_v8 = vpop.f32.mrb[24].mxu1 }
 0x14b   : > { %v1392_v9 = vpop.f32.mrb[24].mxu0  ;;  %v1201_v11 = vpop.f32.mrb[25].mxu1 }
 0x14c   : > { %v1393_v10 = vadd.f32 %v1392_v9, %v1199_v8  ;;  %v1394_v12 = vpop.f32.mrb[25].mxu0  ;;  %v1203_v14 = vpop.f32.mrb[26].mxu1 }
 0x14d   : > { %v1395_v13 = vadd.f32 %v1394_v12, %v1201_v11  ;;  %v1396_v15 = vpop.f32.mrb[26].mxu0  ;;  %v1205_v17 = vpop.f32.mrb[27].mxu1 }
 0x14e   : > { %1710 = vst [vmem:[%s2593_s3 + $0xc0] sm:$0xff] %v1393_v10  ;;  %v1397_v16 = vadd.f32 %v1396_v15, %v1203_v14  ;;  %v1398_v18 = vpop.f32.mrb[27].mxu0 }
 0x14f   : > { %1711 = vst [vmem:[%s2593_s3 + $0xc8] sm:$0xff] %v1395_v13  ;;  %v1399_v19 = vadd.f32 %v1398_v18, %v1205_v17 }
 0x150   : > { %1712 = vst [vmem:[%s2593_s3 + $0xd0] sm:$0xff] %v1397_v16 }
 0x151   : > { %1713 = vst [vmem:[%s2593_s3 + $0xd8] sm:$0xff] %v1399_v19 }
 0x152   : > { %v1209_v20 = vpop.f32.mrb[28].mxu1 }
 0x153   : > { %v1402_v21 = vpop.f32.mrb[28].mxu0  ;;  %v1211_v23 = vpop.f32.mrb[29].mxu1 }
 0x154   : > { %v1403_v22 = vadd.f32 %v1402_v21, %v1209_v20  ;;  %v1404_v24 = vpop.f32.mrb[29].mxu0  ;;  %v1213_v26 = vpop.f32.mrb[30].mxu1 }
 0x155   : > { %v1405_v25 = vadd.f32 %v1404_v24, %v1211_v23  ;;  %v1406_v27 = vpop.f32.mrb[30].mxu0  ;;  %v1215_v29 = vpop.f32.mrb[31].mxu1 }
 0x156   : > { %1714 = vst [vmem:[%s2593_s3 + $0xe0] sm:$0xff] %v1403_v22  ;;  %v1407_v28 = vadd.f32 %v1406_v27, %v1213_v26  ;;  %v1408_v30 = vpop.f32.mrb[31].mxu0 }
 0x157   : > { %1715 = vst [vmem:[%s2593_s3 + $0xe8] sm:$0xff] %v1405_v25  ;;  %v1409_v31 = vadd.f32 %v1408_v30, %v1215_v29 }
 0x158   : > { %1716 = vst [vmem:[%s2593_s3 + $0xf0] sm:$0xff] %v1407_v28 }
 0x159   : > { %1717 = vst [vmem:[%s2593_s3 + $0xf8] sm:$0xff] %v1409_v31 }
 0x15a   : > { %v1219_v32 = vpop.f32.mrb[32].mxu1 }
 0x15b   : > { %v1412_v33 = vpop.f32.mrb[32].mxu0  ;;  %v1221_v35 = vpop.f32.mrb[33].mxu1 }
 0x15c   : > { %v1413_v34 = vadd.f32 %v1412_v33, %v1219_v32  ;;  %v1414_v36 = vpop.f32.mrb[33].mxu0  ;;  %v1223_v38 = vpop.f32.mrb[34].mxu1 }
 0x15d   : > { %v1415_v37 = vadd.f32 %v1414_v36, %v1221_v35  ;;  %v1416_v39 = vpop.f32.mrb[34].mxu0  ;;  %v1225_v41 = vpop.f32.mrb[35].mxu1 }
 0x15e   : > { %1718 = vst [vmem:[%s2593_s3 + $0x100] sm:$0xff] %v1413_v34  ;;  %v1417_v40 = vadd.f32 %v1416_v39, %v1223_v38  ;;  %v1418_v42 = vpop.f32.mrb[35].mxu0 }
 0x15f   : > { %1719 = vst [vmem:[%s2593_s3 + $0x108] sm:$0xff] %v1415_v37  ;;  %v1419_v43 = vadd.f32 %v1418_v42, %v1225_v41 }
 0x160   : > { %1720 = vst [vmem:[%s2593_s3 + $0x110] sm:$0xff] %v1417_v40 }
 0x161   : > { %1721 = vst [vmem:[%s2593_s3 + $0x118] sm:$0xff] %v1419_v43 }
 0x162   : > { %v1229_v44 = vpop.f32.mrb[36].mxu1 }
 0x163   : > { %v1422_v45 = vpop.f32.mrb[36].mxu0  ;;  %v1231_v47 = vpop.f32.mrb[37].mxu1 }
 0x164   : > { %v1423_v46 = vadd.f32 %v1422_v45, %v1229_v44  ;;  %v1424_v48 = vpop.f32.mrb[37].mxu0  ;;  %v1233_v50 = vpop.f32.mrb[38].mxu1 }
 0x165   : > { %v1425_v49 = vadd.f32 %v1424_v48, %v1231_v47  ;;  %v1426_v51 = vpop.f32.mrb[38].mxu0  ;;  %v1235_v53 = vpop.f32.mrb[39].mxu1 }
 0x166   : > { %1722 = vst [vmem:[%s2593_s3 + $0x120] sm:$0xff] %v1423_v46  ;;  %v1427_v52 = vadd.f32 %v1426_v51, %v1233_v50  ;;  %v1428_v54 = vpop.f32.mrb[39].mxu0 }
 0x167   : > { %1723 = vst [vmem:[%s2593_s3 + $0x128] sm:$0xff] %v1425_v49  ;;  %v1429_v55 = vadd.f32 %v1428_v54, %v1235_v53 }
 0x168   : > { %1724 = vst [vmem:[%s2593_s3 + $0x130] sm:$0xff] %v1427_v52 }
 0x169   : > { %1725 = vst [vmem:[%s2593_s3 + $0x138] sm:$0xff] %v1429_v55 }
 0x16a   : > { %v1239_v56 = vpop.f32.mrb[40].mxu1 }
 0x16b   : > { %v1432_v57 = vpop.f32.mrb[40].mxu0  ;;  %v1241_v59 = vpop.f32.mrb[41].mxu1 }
 0x16c   : > { %v1433_v58 = vadd.f32 %v1432_v57, %v1239_v56  ;;  %v1434_v60 = vpop.f32.mrb[41].mxu0  ;;  %v1243_v62 = vpop.f32.mrb[42].mxu1 }
 0x16d   : > { %v1435_v61 = vadd.f32 %v1434_v60, %v1241_v59  ;;  %v1436_v63 = vpop.f32.mrb[42].mxu0  ;;  %v1245_v1 = vpop.f32.mrb[43].mxu1 }
 0x16e   : > { %1726 = vst [vmem:[%s2593_s3 + $0x140] sm:$0xff] %v1433_v58  ;;  %v1437_v0 = vadd.f32 %v1436_v63, %v1243_v62  ;;  %v1438_v2 = vpop.f32.mrb[43].mxu0 }
 0x16f   : > { %1727 = vst [vmem:[%s2593_s3 + $0x148] sm:$0xff] %v1435_v61  ;;  %v1439_v3 = vadd.f32 %v1438_v2, %v1245_v1 }
 0x170   : > { %1728 = vst [vmem:[%s2593_s3 + $0x150] sm:$0xff] %v1437_v0 }
 0x171   : > { %1729 = vst [vmem:[%s2593_s3 + $0x158] sm:$0xff] %v1439_v3 }
 0x172   : > { %v1249_v4 = vpop.f32.mrb[44].mxu1 }
 0x173   : > { %v1442_v5 = vpop.f32.mrb[44].mxu0  ;;  %v1251_v7 = vpop.f32.mrb[45].mxu1 }
 0x174   : > { %v1443_v6 = vadd.f32 %v1442_v5, %v1249_v4  ;;  %v1444_v8 = vpop.f32.mrb[45].mxu0  ;;  %v1253_v10 = vpop.f32.mrb[46].mxu1 }
 0x175   : > { %v1445_v9 = vadd.f32 %v1444_v8, %v1251_v7  ;;  %v1446_v11 = vpop.f32.mrb[46].mxu0  ;;  %v1255_v13 = vpop.f32.mrb[47].mxu1 }
 0x176   : > { %1730 = vst [vmem:[%s2593_s3 + $0x160] sm:$0xff] %v1443_v6  ;;  %v1447_v12 = vadd.f32 %v1446_v11, %v1253_v10  ;;  %v1448_v14 = vpop.f32.mrb[47].mxu0 }
 0x177   : > { %1731 = vst [vmem:[%s2593_s3 + $0x168] sm:$0xff] %v1445_v9  ;;  %v1449_v15 = vadd.f32 %v1448_v14, %v1255_v13 }
 0x178   : > { %1732 = vst [vmem:[%s2593_s3 + $0x170] sm:$0xff] %v1447_v12 }
 0x179   : > { %1733 = vst [vmem:[%s2593_s3 + $0x178] sm:$0xff] %v1449_v15 }
 0x17a   : > { %v1259_v16 = vpop.f32.mrb[48].mxu1 }
 0x17b   : > { %v1452_v17 = vpop.f32.mrb[48].mxu0  ;;  %v1261_v19 = vpop.f32.mrb[49].mxu1 }
 0x17c   : > { %v1453_v18 = vadd.f32 %v1452_v17, %v1259_v16  ;;  %v1454_v20 = vpop.f32.mrb[49].mxu0  ;;  %v1263_v22 = vpop.f32.mrb[50].mxu1 }
 0x17d   : > { %v1455_v21 = vadd.f32 %v1454_v20, %v1261_v19  ;;  %v1456_v23 = vpop.f32.mrb[50].mxu0  ;;  %v1265_v25 = vpop.f32.mrb[51].mxu1 }
 0x17e   : > { %1734 = vst [vmem:[%s2593_s3 + $0x180] sm:$0xff] %v1453_v18  ;;  %v1457_v24 = vadd.f32 %v1456_v23, %v1263_v22  ;;  %v1458_v26 = vpop.f32.mrb[51].mxu0 }
 0x17f   : > { %1735 = vst [vmem:[%s2593_s3 + $0x188] sm:$0xff] %v1455_v21  ;;  %v1459_v27 = vadd.f32 %v1458_v26, %v1265_v25 }
 0x180   : > { %1736 = vst [vmem:[%s2593_s3 + $0x190] sm:$0xff] %v1457_v24 }
 0x181   : > { %1737 = vst [vmem:[%s2593_s3 + $0x198] sm:$0xff] %v1459_v27 }
 0x182   : > { %v1269_v28 = vpop.f32.mrb[52].mxu1 }
 0x183   : > { %v1462_v29 = vpop.f32.mrb[52].mxu0  ;;  %v1271_v31 = vpop.f32.mrb[53].mxu1 }
 0x184   : > { %v1463_v30 = vadd.f32 %v1462_v29, %v1269_v28  ;;  %v1464_v32 = vpop.f32.mrb[53].mxu0  ;;  %v1273_v34 = vpop.f32.mrb[54].mxu1 }
 0x185   : > { %v1465_v33 = vadd.f32 %v1464_v32, %v1271_v31  ;;  %v1466_v35 = vpop.f32.mrb[54].mxu0  ;;  %v1275_v37 = vpop.f32.mrb[55].mxu1 }
 0x186   : > { %1738 = vst [vmem:[%s2593_s3 + $0x1a0] sm:$0xff] %v1463_v30  ;;  %v1467_v36 = vadd.f32 %v1466_v35, %v1273_v34  ;;  %v1468_v38 = vpop.f32.mrb[55].mxu0 }
 0x187   : > { %1739 = vst [vmem:[%s2593_s3 + $0x1a8] sm:$0xff] %v1465_v33  ;;  %v1469_v39 = vadd.f32 %v1468_v38, %v1275_v37 }
 0x188   : > { %1740 = vst [vmem:[%s2593_s3 + $0x1b0] sm:$0xff] %v1467_v36 }
 0x189   : > { %1741 = vst [vmem:[%s2593_s3 + $0x1b8] sm:$0xff] %v1469_v39 }
 0x18a   : > { %v1279_v40 = vpop.f32.mrb[56].mxu1 }
 0x18b   : > { %v1472_v41 = vpop.f32.mrb[56].mxu0  ;;  %v1281_v43 = vpop.f32.mrb[57].mxu1 }
 0x18c   : > { %v1473_v42 = vadd.f32 %v1472_v41, %v1279_v40  ;;  %v1474_v44 = vpop.f32.mrb[57].mxu0  ;;  %v1283_v46 = vpop.f32.mrb[58].mxu1 }
 0x18d   : > { %v1475_v45 = vadd.f32 %v1474_v44, %v1281_v43  ;;  %v1476_v47 = vpop.f32.mrb[58].mxu0  ;;  %v1285_v49 = vpop.f32.mrb[59].mxu1 }
 0x18e   : > { %1742 = vst [vmem:[%s2593_s3 + $0x1c0] sm:$0xff] %v1473_v42  ;;  %v1477_v48 = vadd.f32 %v1476_v47, %v1283_v46  ;;  %v1478_v50 = vpop.f32.mrb[59].mxu0 }
 0x18f   : > { %1743 = vst [vmem:[%s2593_s3 + $0x1c8] sm:$0xff] %v1475_v45  ;;  %v1479_v51 = vadd.f32 %v1478_v50, %v1285_v49 }
 0x190   : > { %1744 = vst [vmem:[%s2593_s3 + $0x1d0] sm:$0xff] %v1477_v48 }
 0x191   : > { %1745 = vst [vmem:[%s2593_s3 + $0x1d8] sm:$0xff] %v1479_v51 }
 0x192   : > { %v1289_v52 = vpop.f32.mrb[60].mxu1 }
 0x193   : > { %v1482_v53 = vpop.f32.mrb[60].mxu0  ;;  %v1291_v55 = vpop.f32.mrb[61].mxu1 }
 0x194   : > { %v1483_v54 = vadd.f32 %v1482_v53, %v1289_v52  ;;  %v1484_v56 = vpop.f32.mrb[61].mxu0  ;;  %v1293_v58 = vpop.f32.mrb[62].mxu1 }
 0x195   : > { %v1485_v57 = vadd.f32 %v1484_v56, %v1291_v55  ;;  %v1486_v59 = vpop.f32.mrb[62].mxu0  ;;  %v1295_v61 = vpop.f32.mrb[63].mxu1 }
 0x196   : > { %1746 = vst [vmem:[%s2593_s3 + $0x1e0] sm:$0xff] %v1483_v54  ;;  %v1487_v60 = vadd.f32 %v1486_v59, %v1293_v58  ;;  %v1488_v62 = vpop.f32.mrb[63].mxu0 }
 0x197   : > { %1747 = vst [vmem:[%s2593_s3 + $0x1e8] sm:$0xff] %v1485_v57  ;;  %v1489_v63 = vadd.f32 %v1488_v62, %v1295_v61 }
 0x198   : > { %1748 = vst [vmem:[%s2593_s3 + $0x1f0] sm:$0xff] %v1487_v60 }
 0x199   : > { %1749 = vst [vmem:[%s2593_s3 + $0x1f8] sm:$0xff] %v1489_v63 }
 0x19a PF: > { %s12_s11 = sadd.s32 1, %s2284_s11   ;;  %s2671_s9 = smov %s2280_s10 }
 0x19b   : > { %p9_p5 = scmp.ge.s32.totalorder %s12_s11, 4   ;;  %s2672_s10 = smov %s2674_s12 }
 0x19d   :  { %11 = sbr.rel (!%p9_p5) target bundleno = 2 (0x2), region = 69 }

</bundles_post_ra>
